<compile_context>
chip_gen: v7x
topology: tpu7x:2x2x1
jax: 0.10.0
libtpu: 0.0.40
codegen_flags: <defaults>
</compile_context>

<pallas_src>
import math
from functools import partial

import jax
import jax.numpy as jnp
from jax import lax
from jax.experimental import pallas as pl
from jax.experimental.pallas import tpu as pltpu

TEMPERATURE = 1.0
EPS = 1e-8
_NEG_BIG = -1e30   # exp(-1e30) == 0.0 in f32: masks padded splat columns exactly


def _round_up(x, m):
    return ((x + m - 1) // m) * m


def _pad2(x, rows, cols, dtype):
    x = x.astype(dtype)
    r, c = x.shape
    if r == rows and c == cols:
        return x
    return jnp.pad(x, ((0, rows - r), (0, cols - c)))


def _pad3(x, sp, dp, dtype):
    x = x.astype(dtype)
    _, s, d = x.shape
    if s == sp and d == dp:
        return x
    return jnp.pad(x, ((0, 0), (0, sp - s), (0, dp - d)))


def _phase1_kernel(tokens_ref, c_scaled_ref, consts_ref, w_fused_ref,
                   aff_ref, ss_ref, raw_ss_acc):
    """Affinities for one (batch, seq-tile); accumulate raw_ss = sum_s aff^T @ tokens;
    apply the fused projection W_fused = Wv^T @ Wo^T once at the final seq tile."""
    s_idx = pl.program_id(1)
    n_s = pl.num_programs(1)
    mm_dtype = w_fused_ref.dtype

    t = tokens_ref[0]                       # (ts, Dp) f32 — distance path stays f32
    nh = consts_ref[0:1, :]                 # (1, Kp)  (-0.5/scale^2)/T   (0 on pads)
    col_add = consts_ref[1:2, :]            # (1, Kp)  nh*||c||^2    (-1e30 on pads)

    # ||t-c||^2 expansion, with -2*nh folded into the centers in the wrapper:
    #   exponent = nh*||t||^2 + t @ (-2*nh*c)^T + nh*||c||^2
    t_norm = jnp.sum(t * t, axis=-1, keepdims=True)                          # (ts,1)
    tc = jnp.dot(t, c_scaled_ref[...], preferred_element_type=jnp.float32)   # MXU
    exponent = t_norm * nh + tc + col_add                                    # (ts,Kp)
    aff = jnp.exp(exponent)                                                  # EUP
    denom = jnp.sum(aff, axis=-1, keepdims=True) + EPS
    aff = aff * pl.reciprocal(denom, approx=True)                            # EUP recip
    aff_lp = aff.astype(mm_dtype)
    aff_ref[0] = aff_lp                                                      # bf16 store

    @pl.when(s_idx == 0)
    def _():
        raw_ss_acc[...] = jnp.zeros_like(raw_ss_acc)

    # raw_ss += einsum('sk,sd->kd', aff, tokens)  (contract dim 0; no transpose)
    raw_ss_acc[...] += lax.dot_general(
        aff_lp, t.astype(mm_dtype),
        dimension_numbers=(((0,), (0,)), ((), ())),
        preferred_element_type=jnp.float32)

    @pl.when(s_idx == n_s - 1)
    def _():
        ss_proj = jnp.dot(raw_ss_acc[...].astype(mm_dtype), w_fused_ref[...],
                          preferred_element_type=jnp.float32)
        ss_ref[0] = ss_proj.astype(ss_ref.dtype)


def _phase2_kernel(aff_ref, ss_ref, out_ref):
    """token_outputs(+output proj, already fused) = aff @ ss_proj."""
    out = jnp.dot(aff_ref[0], ss_ref[0], preferred_element_type=jnp.float32)
    out_ref[0] = out.astype(out_ref.dtype)


def _resolve_tuning(seq_block, vmem_limit_bytes):
    """Generation-aware defaults: big tiles on v5e/v6e (128 MiB VMEM), capped on v7x."""
    vmem_cap = 128 * 1024 * 1024
    try:
        vmem_cap = int(pltpu.get_tpu_info().vmem_capacity_bytes)
    except Exception:
        pass
    if vmem_cap >= 100 * 1024 * 1024:          # v5e / v6e
        sb_def, vl_def = 512, 64 * 1024 * 1024
    else:                                       # v7x (64 MiB per TC)
        sb_def, vl_def = 256, 48 * 1024 * 1024
    if seq_block is None:
        seq_block = sb_def
    if vmem_limit_bytes is None:
        vmem_limit_bytes = vl_def
    return seq_block, vmem_limit_bytes


@partial(jax.jit, static_argnames=("temperature", "seq_block", "matmul_dtype",
                                   "vmem_limit_bytes", "buffered_invariants"))
def _splat_attention_impl(tokens, centers, log_scales, wv, wo, *,
                          temperature, seq_block, matmul_dtype,
                          vmem_limit_bytes, buffered_invariants):
    B, S, D = tokens.shape
    K = centers.shape[0]
    f32 = jnp.float32

    Dp = _round_up(D, 128)
    Kp = _round_up(K, 128)
    if S >= seq_block:
        ts = seq_block
        Sp = _round_up(S, seq_block)
    else:
        ts = _round_up(S, 8)
        Sp = ts
    n_s = Sp // ts

    # Tokens stay f32: distance accuracy + padded rows are exactly zero so they
    # contribute zero to raw_ss = aff^T @ tokens (padding invariant).
    tokens_p = _pad3(tokens, Sp, Dp, f32)

    # Hoisted per-splat scale math: get_scale() = clamp(exp(log_scale), 0.1, 2.0).
    scales = jnp.clip(jnp.exp(log_scales.astype(f32)), 0.1, 2.0)
    nh = (-0.5 / (scales * scales)) / temperature                            # (K,)
    c_f32 = centers.astype(f32)
    c_norm_sq = jnp.sum(c_f32 * c_f32, axis=-1)                              # (K,)
    c_scaled = _pad2((c_f32 * (-2.0 * nh)[:, None]).T, Dp, Kp, f32)          # (Dp,Kp)
    nh_p = jnp.pad(nh, (0, Kp - K)) if Kp != K else nh
    col_add = nh * c_norm_sq
    col_add_p = (jnp.pad(col_add, (0, Kp - K), constant_values=_NEG_BIG)
                 if Kp != K else col_add)
    consts = jnp.stack([nh_p, col_add_p], axis=0)                            # (2, Kp)

    # Fused projection (valid because dropout is identity at inference); f32 product.
    w_fused = _pad2(jnp.dot(wv.astype(f32).T, wo.astype(f32).T), Dp, Dp, matmul_dtype)

    def _inv_spec(shape):
        idx = lambda b, s: (0,) * len(shape)
        if buffered_invariants:
            # Grid-invariant blocks: single-buffer to halve their VMEM footprint.
            return pl.BlockSpec(shape, idx, pipeline_mode=pl.Buffered(1))
        return pl.BlockSpec(shape, idx)

    itemsize = jnp.dtype(matmul_dtype).itemsize
    flops1 = 4 * B * Sp * Kp * Dp + 2 * B * Kp * Dp * Dp
    bytes1 = (4 * (B * Sp * Dp + Dp * Kp + 2 * Kp)
              + itemsize * (Dp * Dp + B * Sp * Kp + B * Kp * Dp))

    aff, ss_proj = pl.pallas_call(
        _phase1_kernel,
        grid=(B, n_s),
        in_specs=[
            pl.BlockSpec((1, ts, Dp), lambda b, s: (b, s, 0)),   # tokens tile
            _inv_spec((Dp, Kp)),                                  # (-2*nh)*centers^T
            _inv_spec((2, Kp)),                                   # per-splat constants
            _inv_spec((Dp, Dp)),                                  # W_fused = Wv^T @ Wo^T
        ],
        out_specs=(
            pl.BlockSpec((1, ts, Kp), lambda b, s: (b, s, 0)),    # affinities (bf16)
            pl.BlockSpec((1, Kp, Dp), lambda b, s: (b, 0, 0)),    # ss_proj (written at last s)
        ),
        out_shape=(
            jax.ShapeDtypeStruct((B, Sp, Kp), matmul_dtype),
            jax.ShapeDtypeStruct((B, Kp, Dp), matmul_dtype),
        ),
        scratch_shapes=[pltpu.VMEM((Kp, Dp), jnp.float32)],       # raw_ss accumulator
        compiler_params=pltpu.CompilerParams(
            dimension_semantics=("parallel", "arbitrary"),
            vmem_limit_bytes=vmem_limit_bytes),
        cost_estimate=pl.CostEstimate(
            flops=flops1, transcendentals=B * Sp * Kp, bytes_accessed=bytes1),
    )(tokens_p, c_scaled, consts, w_fused)

    flops2 = 2 * B * Sp * Kp * Dp
    bytes2 = itemsize * (B * Sp * Kp + B * Kp * Dp) + 4 * B * Sp * Dp
    out_p = pl.pallas_call(
        _phase2_kernel,
        grid=(B, n_s),
        in_specs=[
            pl.BlockSpec((1, ts, Kp), lambda b, s: (b, s, 0)),    # affinities tile
            pl.BlockSpec((1, Kp, Dp), lambda b, s: (b, 0, 0)),    # ss_proj (per batch)
        ],
        out_specs=pl.BlockSpec((1, ts, Dp), lambda b, s: (b, s, 0)),
        out_shape=jax.ShapeDtypeStruct((B, Sp, Dp), tokens.dtype),
        compiler_params=pltpu.CompilerParams(
            dimension_semantics=("parallel", "parallel"),
            vmem_limit_bytes=vmem_limit_bytes),
        cost_estimate=pl.CostEstimate(
            flops=flops2, transcendentals=0, bytes_accessed=bytes2),
    )(aff, ss_proj)

    return out_p[:, :S, :D]


def splat_attention(tokens, centers, log_scales, wv, wo, *,
                    temperature=TEMPERATURE, seq_block=None,
                    matmul_dtype=jnp.bfloat16, vmem_limit_bytes=None,
                    buffered_invariants=True):
    """tokens (B,S,D); centers (K,D); log_scales (K,); wv/wo (D,D) in (out,in) order."""
    seq_block, vmem_limit_bytes = _resolve_tuning(seq_block, vmem_limit_bytes)
    kwargs = dict(temperature=temperature, seq_block=seq_block,
                  matmul_dtype=matmul_dtype, vmem_limit_bytes=vmem_limit_bytes)
    if buffered_invariants:
        try:
            return _splat_attention_impl(tokens, centers, log_scales, wv, wo,
                                         buffered_invariants=True, **kwargs)
        except Exception:
            pass  # single-buffer pipeline_mode unsupported on this jax -> default buffering
    return _splat_attention_impl(tokens, centers, log_scales, wv, wo,
                                 buffered_invariants=False, **kwargs)


def splat_attention_ref(tokens, centers, log_scales, wv, wo, temperature=TEMPERATURE):
    """Pure-JAX reference mirroring the PyTorch forward (eval mode)."""
    scales = jnp.clip(jnp.exp(log_scales), 0.1, 2.0)                 # (K,)
    diff = tokens[:, :, None, :] - centers[None, None, :, :]          # (B,S,K,D)
    dist_sq = jnp.sum(diff * diff, axis=-1)                           # (B,S,K)
    aff = jnp.exp(-0.5 * dist_sq / (scales ** 2)[None, None, :])
    aff = aff ** (1.0 / temperature)
    aff = aff / (jnp.sum(aff, axis=-1, keepdims=True) + EPS)
    tv = tokens @ wv.T
    ss = jnp.einsum('bsk,bsd->bkd', aff, tv)
    to = jnp.einsum('bsk,bkd->bsd', aff, ss)
    return to @ wo.T


if __name__ == "__main__":
    B, S, D, K = 2, 8, 32, 16   # batch, seq, model_dim, initial_splats

    key = jax.random.PRNGKey(0)
    k_tok, k_pos, k_scale, k_wv, k_wo = jax.random.split(key, 5)

    tokens = jax.random.normal(k_tok, (B, S, D), dtype=jnp.float32)

    # Adaptive splat init (matches _initialize_adaptive_splats):
    #   position ~ N(0,1)*0.02 ; scale = 0.5 + U(0,1)*0.5 ; log_scale = log(scale)
    centers = jax.random.normal(k_pos, (K, D), dtype=jnp.float32) * 0.02
    scales_init = 0.5 + jax.random.uniform(k_scale, (K,), dtype=jnp.float32) * 0.5
    log_scales = jnp.log(scales_init)

    # Xavier-uniform Linear weights (out, in) = (D, D), bias=False
    limit = math.sqrt(6.0 / (D + D))
    wv = jax.random.uniform(k_wv, (D, D), dtype=jnp.float32, minval=-limit, maxval=limit)
    wo = jax.random.uniform(k_wo, (D, D), dtype=jnp.float32, minval=-limit, maxval=limit)

    ref = splat_attention_ref(tokens, centers, log_scales, wv, wo)

    # f32 matmul path: only the approx reciprocal / norm-expansion differ from ref.
    out_f32 = splat_attention(tokens, centers, log_scales, wv, wo,
                              matmul_dtype=jnp.float32)
    out_f32 = jax.block_until_ready(out_f32)
    assert out_f32.shape == (B, S, D)
    assert jnp.allclose(out_f32, ref, rtol=1e-2, atol=1e-2), "f32 path mismatch vs reference"

    # Default bf16 matmul path (distance/exp/normalize remain f32).
    out_bf16 = splat_attention(tokens, centers, log_scales, wv, wo)
    out_bf16 = jax.block_until_ready(out_bf16)
    assert out_bf16.shape == (B, S, D)
    assert jnp.allclose(out_bf16, ref, rtol=5e-2, atol=5e-2), "bf16 path mismatch vs reference"

    print("KERNEL_OK")
</pallas_src>

<mosaic_0001>
module attributes {stable_mosaic.version = 11 : i64} {
  func.func @_phase2_kernel(%arg0: i32, %arg1: i32, %arg2: memref<1x8x128xf32, #tpu.memory_space<vmem>>, %arg3: memref<1x128x128xf32, #tpu.memory_space<vmem>>, %arg4: memref<1x8x128xf32, #tpu.memory_space<vmem>>) attributes {dimension_semantics = [#tpu.dimension_semantics<parallel>, #tpu.dimension_semantics<parallel>], iteration_bounds = array<i64: 2, 1>, scalar_prefetch = 0 : i64, scratch_operands = 0 : i64, tpu.core_type = #tpu.core_type<tc>, window_params = [{transform_indices = @transform_0, window_bounds = array<i64: 1, 8, 128>}, {transform_indices = @transform_1, window_bounds = array<i64: 1, 128, 128>}, {transform_indices = @transform_2, window_bounds = array<i64: 1, 8, 128>}]} {
    %c0 = arith.constant 0 : index
    %c0_0 = arith.constant 0 : index
    %c0_1 = arith.constant 0 : index
    %0 = vector.load %arg2[%c0, %c0_0, %c0_1] : memref<1x8x128xf32, #tpu.memory_space<vmem>>, vector<1x8x128xf32>
    %1 = vector.shape_cast %0 : vector<1x8x128xf32> to vector<8x128xf32>
    %c0_2 = arith.constant 0 : index
    %c0_3 = arith.constant 0 : index
    %c0_4 = arith.constant 0 : index
    %2 = vector.load %arg3[%c0_2, %c0_3, %c0_4] : memref<1x128x128xf32, #tpu.memory_space<vmem>>, vector<1x128x128xf32>
    %3 = vector.shape_cast %2 : vector<1x128x128xf32> to vector<128x128xf32>
    %cst = arith.constant dense<0.000000e+00> : vector<8x128xf32>
    %4 = tpu.matmul %1, %3, %cst {dimension_numbers = #tpu.dot_dimension_numbers<[1], [0], [0], [1], [0, 0, 1, 1], [], []>} : vector<8x128xf32>, vector<128x128xf32>, vector<8x128xf32> -> vector<8x128xf32>
    %c0_5 = arith.constant 0 : index
    %c0_6 = arith.constant 0 : index
    %c0_7 = arith.constant 0 : index
    %5 = vector.load %arg4[%c0_5, %c0_6, %c0_7] : memref<1x8x128xf32, #tpu.memory_space<vmem>>, vector<1x8x128xf32>
    %6 = vector.shape_cast %5 : vector<1x8x128xf32> to vector<8x128xf32>
    %7 = vector.shape_cast %4 : vector<8x128xf32> to vector<1x8x128xf32>
    tpu.vector_store %arg4[%c0_5, %c0_6, %c0_7], %7 {strides = array<i32>} : memref<1x8x128xf32, #tpu.memory_space<vmem>>, vector<1x8x128xf32>,
    return
  }
  func.func @transform_0(%arg0: i32, %arg1: i32) -> (i32, i32, i32) {
    %c0_i32 = arith.constant 0 : i32
    %c0_i32_0 = arith.constant 0 : i32
    return %arg0, %arg1, %c0_i32 : i32, i32, i32
  }
  func.func @transform_1(%arg0: i32, %arg1: i32) -> (i32, i32, i32) {
    %c0_i32 = arith.constant 0 : i32
    %c0_i32_0 = arith.constant 0 : i32
    %c0_i32_1 = arith.constant 0 : i32
    return %arg0, %c0_i32, %c0_i32_0 : i32, i32, i32
  }
  func.func @transform_2(%arg0: i32, %arg1: i32) -> (i32, i32, i32) {
    %c0_i32 = arith.constant 0 : i32
    %c0_i32_0 = arith.constant 0 : i32
    return %arg0, %arg1, %c0_i32 : i32, i32, i32
  }
}

module attributes {stable_mosaic.version = 11 : i64} {
  func.func @_phase1_kernel(%arg0: i32, %arg1: i32, %arg2: memref<1x8x128xf32, #tpu.memory_space<vmem>>, %arg3: memref<128x128xf32, #tpu.memory_space<vmem>>, %arg4: memref<2x128xf32, #tpu.memory_space<vmem>>, %arg5: memref<128x128xf32, #tpu.memory_space<vmem>>, %arg6: memref<1x8x128xf32, #tpu.memory_space<vmem>>, %arg7: memref<1x128x128xf32, #tpu.memory_space<vmem>>, %arg8: memref<128x128xf32, #tpu.memory_space<vmem>>) attributes {dimension_semantics = [#tpu.dimension_semantics<parallel>, #tpu.dimension_semantics<arbitrary>], iteration_bounds = array<i64: 2, 1>, scalar_prefetch = 0 : i64, scratch_operands = 1 : i64, tpu.core_type = #tpu.core_type<tc>, window_params = [{transform_indices = @transform_0, window_bounds = array<i64: 1, 8, 128>}, {pipeline_mode = #tpu.pipeline_mode<synchronous>, transform_indices = @transform_1, window_bounds = array<i64: 128, 128>}, {pipeline_mode = #tpu.pipeline_mode<synchronous>, transform_indices = @transform_2, window_bounds = array<i64: 2, 128>}, {pipeline_mode = #tpu.pipeline_mode<synchronous>, transform_indices = @transform_3, window_bounds = array<i64: 128, 128>}, {transform_indices = @transform_4, window_bounds = array<i64: 1, 8, 128>}, {transform_indices = @transform_5, window_bounds = array<i64: 1, 128, 128>}]} {
    %c0 = arith.constant 0 : index
    %c0_0 = arith.constant 0 : index
    %c0_1 = arith.constant 0 : index
    %0 = vector.load %arg2[%c0, %c0_0, %c0_1] : memref<1x8x128xf32, #tpu.memory_space<vmem>>, vector<1x8x128xf32>
    %1 = vector.shape_cast %0 : vector<1x8x128xf32> to vector<8x128xf32>
    %c0_2 = arith.constant 0 : index
    %c0_3 = arith.constant 0 : index
    %2 = vector.load %arg4[%c0_2, %c0_3] : memref<2x128xf32, #tpu.memory_space<vmem>>, vector<1x128xf32>
    %c1 = arith.constant 1 : index
    %c0_4 = arith.constant 0 : index
    %3 = vector.load %arg4[%c1, %c0_4] : memref<2x128xf32, #tpu.memory_space<vmem>>, vector<1x128xf32>
    %4 = arith.mulf %1, %1 : vector<8x128xf32>
    %cst = arith.constant dense<0.000000e+00> : vector<8xf32>
    %5 = vector.multi_reduction <add>, %4, %cst [1] : vector<8x128xf32> to vector<8xf32>
    %6 = vector.shape_cast %5 : vector<8xf32> to vector<8x1xf32>
    %c0_5 = arith.constant 0 : index
    %c0_6 = arith.constant 0 : index
    %7 = vector.load %arg3[%c0_5, %c0_6] : memref<128x128xf32, #tpu.memory_space<vmem>>, vector<128x128xf32>
    %cst_7 = arith.constant dense<0.000000e+00> : vector<8x128xf32>
    %8 = tpu.matmul %1, %7, %cst_7 {dimension_numbers = #tpu.dot_dimension_numbers<[1], [0], [0], [1], [0, 0, 1, 1], [], []>} : vector<8x128xf32>, vector<128x128xf32>, vector<8x128xf32> -> vector<8x128xf32>
    %9 = vector.broadcast %6 : vector<8x1xf32> to vector<8x128xf32>
    %10 = vector.broadcast %2 : vector<1x128xf32> to vector<8x128xf32>
    %11 = arith.mulf %9, %10 : vector<8x128xf32>
    %12 = arith.addf %11, %8 : vector<8x128xf32>
    %13 = vector.broadcast %3 : vector<1x128xf32> to vector<8x128xf32>
    %14 = arith.addf %12, %13 : vector<8x128xf32>
    %15 = math.exp %14 : vector<8x128xf32>
    %cst_8 = arith.constant dense<0.000000e+00> : vector<8xf32>
    %16 = vector.multi_reduction <add>, %15, %cst_8 [1] : vector<8x128xf32> to vector<8xf32>
    %17 = vector.shape_cast %16 : vector<8xf32> to vector<8x1xf32>
    %cst_9 = arith.constant 9.99999993E-9 : f32
    %18 = vector.broadcast %cst_9 : f32 to vector<8x1xf32>
    %19 = arith.addf %17, %18 : vector<8x1xf32>
    %20 = tpu.reciprocal %19 {approx = true} : vector<8x1xf32> -> vector<8x1xf32>
    %21 = vector.broadcast %20 : vector<8x1xf32> to vector<8x128xf32>
    %22 = arith.mulf %15, %21 : vector<8x128xf32>
    %c0_10 = arith.constant 0 : index
    %c0_11 = arith.constant 0 : index
    %c0_12 = arith.constant 0 : index
    %23 = vector.load %arg6[%c0_10, %c0_11, %c0_12] : memref<1x8x128xf32, #tpu.memory_space<vmem>>, vector<1x8x128xf32>
    %24 = vector.shape_cast %23 : vector<1x8x128xf32> to vector<8x128xf32>
    %25 = vector.shape_cast %22 : vector<8x128xf32> to vector<1x8x128xf32>
    tpu.vector_store %arg6[%c0_10, %c0_11, %c0_12], %25 {strides = array<i32>} : memref<1x8x128xf32, #tpu.memory_space<vmem>>, vector<1x8x128xf32>,
    %c0_i32 = arith.constant 0 : i32
    %26 = arith.cmpi eq, %arg1, %c0_i32 : i32
    %27 = arith.extui %26 : i1 to i32
    %c0_i32_13 = arith.constant 0 : i32
    %28 = arith.cmpi ne, %27, %c0_i32_13 : i32
    scf.if %28 {
      %cst_21 = arith.constant 0.000000e+00 : f32
      %36 = vector.broadcast %cst_21 : f32 to vector<128x128xf32>
      %c0_22 = arith.constant 0 : index
      %c0_23 = arith.constant 0 : index
      %37 = vector.load %arg8[%c0_22, %c0_23] : memref<128x128xf32, #tpu.memory_space<vmem>>, vector<128x128xf32>
      tpu.vector_store %arg8[%c0_22, %c0_23], %36 {strides = array<i32>} : memref<128x128xf32, #tpu.memory_space<vmem>>, vector<128x128xf32>,
    } else {
    }
    %c0_14 = arith.constant 0 : index
    %c0_15 = arith.constant 0 : index
    %29 = vector.load %arg8[%c0_14, %c0_15] : memref<128x128xf32, #tpu.memory_space<vmem>>, vector<128x128xf32>
    %cst_16 = arith.constant dense<0.000000e+00> : vector<128x128xf32>
    %30 = tpu.matmul %22, %1, %cst_16 {dimension_numbers = #tpu.dot_dimension_numbers<[0], [0], [1], [1], [0, 1, 1, 1], [], []>} : vector<8x128xf32>, vector<8x128xf32>, vector<128x128xf32> -> vector<128x128xf32>
    %31 = arith.addf %29, %30 : vector<128x128xf32>
    %c0_17 = arith.constant 0 : index
    %c0_18 = arith.constant 0 : index
    %32 = vector.load %arg8[%c0_17, %c0_18] : memref<128x128xf32, #tpu.memory_space<vmem>>, vector<128x128xf32>
    tpu.vector_store %arg8[%c0_17, %c0_18], %31 {strides = array<i32>} : memref<128x128xf32, #tpu.memory_space<vmem>>, vector<128x128xf32>,
    %c0_i32_19 = arith.constant 0 : i32
    %33 = arith.cmpi eq, %arg1, %c0_i32_19 : i32
    %34 = arith.extui %33 : i1 to i32
    %c0_i32_20 = arith.constant 0 : i32
    %35 = arith.cmpi ne, %34, %c0_i32_20 : i32
    scf.if %35 {
      %c0_21 = arith.constant 0 : index
      %c0_22 = arith.constant 0 : index
      %36 = vector.load %arg8[%c0_21, %c0_22] : memref<128x128xf32, #tpu.memory_space<vmem>>, vector<128x128xf32>
      %c0_23 = arith.constant 0 : index
      %c0_24 = arith.constant 0 : index
      %37 = vector.load %arg5[%c0_23, %c0_24] : memref<128x128xf32, #tpu.memory_space<vmem>>, vector<128x128xf32>
      %cst_25 = arith.constant dense<0.000000e+00> : vector<128x128xf32>
      %38 = tpu.matmul %36, %37, %cst_25 {dimension_numbers = #tpu.dot_dimension_numbers<[1], [0], [0], [1], [0, 0, 1, 1], [], []>} : vector<128x128xf32>, vector<128x128xf32>, vector<128x128xf32> -> vector<128x128xf32>
      %c0_26 = arith.constant 0 : index
      %c0_27 = arith.constant 0 : index
      %c0_28 = arith.constant 0 : index
      %39 = vector.load %arg7[%c0_26, %c0_27, %c0_28] : memref<1x128x128xf32, #tpu.memory_space<vmem>>, vector<1x128x128xf32>
      %40 = vector.shape_cast %39 : vector<1x128x128xf32> to vector<128x128xf32>
      %41 = vector.shape_cast %38 : vector<128x128xf32> to vector<1x128x128xf32>
      tpu.vector_store %arg7[%c0_26, %c0_27, %c0_28], %41 {strides = array<i32>} : memref<1x128x128xf32, #tpu.memory_space<vmem>>, vector<1x128x128xf32>,
    } else {
    }
    return
  }
  func.func @transform_0(%arg0: i32, %arg1: i32) -> (i32, i32, i32) {
    %c0_i32 = arith.constant 0 : i32
    %c0_i32_0 = arith.constant 0 : i32
    return %arg0, %arg1, %c0_i32 : i32, i32, i32
  }
  func.func @transform_1(%arg0: i32, %arg1: i32) -> (i32, i32) {
    %c0_i32 = arith.constant 0 : i32
    %c0_i32_0 = arith.constant 0 : i32
    %c0_i32_1 = arith.constant 0 : i32
    return %c0_i32, %c0_i32_0 : i32, i32
  }
  func.func @transform_2(%arg0: i32, %arg1: i32) -> (i32, i32) {
    %c0_i32 = arith.constant 0 : i32
    %c0_i32_0 = arith.constant 0 : i32
    %c0_i32_1 = arith.constant 0 : i32
    return %c0_i32, %c0_i32_0 : i32, i32
  }
  func.func @transform_3(%arg0: i32, %arg1: i32) -> (i32, i32) {
    %c0_i32 = arith.constant 0 : i32
    %c0_i32_0 = arith.constant 0 : i32
    %c0_i32_1 = arith.constant 0 : i32
    return %c0_i32, %c0_i32_0 : i32, i32
  }
  func.func @transform_4(%arg0: i32, %arg1: i32) -> (i32, i32, i32) {
    %c0_i32 = arith.constant 0 : i32
    %c0_i32_0 = arith.constant 0 : i32
    return %arg0, %arg1, %c0_i32 : i32, i32, i32
  }
  func.func @transform_5(%arg0: i32, %arg1: i32) -> (i32, i32, i32) {
    %c0_i32 = arith.constant 0 : i32
    %c0_i32_0 = arith.constant 0 : i32
    %c0_i32_1 = arith.constant 0 : i32
    return %arg0, %c0_i32, %c0_i32_0 : i32, i32, i32
  }
}

module attributes {stable_mosaic.version = 11 : i64} {
  func.func @_phase1_kernel(%arg0: i32, %arg1: i32, %arg2: memref<1x8x128xf32, #tpu.memory_space<vmem>>, %arg3: memref<128x128xf32, #tpu.memory_space<vmem>>, %arg4: memref<2x128xf32, #tpu.memory_space<vmem>>, %arg5: memref<128x128xf32, #tpu.memory_space<vmem>>, %arg6: memref<1x8x128xf32, #tpu.memory_space<vmem>>, %arg7: memref<1x128x128xf32, #tpu.memory_space<vmem>>, %arg8: memref<128x128xf32, #tpu.memory_space<vmem>>) attributes {dimension_semantics = [#tpu.dimension_semantics<parallel>, #tpu.dimension_semantics<arbitrary>], iteration_bounds = array<i64: 2, 1>, scalar_prefetch = 0 : i64, scratch_operands = 1 : i64, tpu.core_type = #tpu.core_type<tc>, window_params = [{transform_indices = @transform_0, window_bounds = array<i64: 1, 8, 128>}, {pipeline_mode = #tpu.pipeline_mode<synchronous>, transform_indices = @transform_1, window_bounds = array<i64: 128, 128>}, {pipeline_mode = #tpu.pipeline_mode<synchronous>, transform_indices = @transform_2, window_bounds = array<i64: 2, 128>}, {pipeline_mode = #tpu.pipeline_mode<synchronous>, transform_indices = @transform_3, window_bounds = array<i64: 128, 128>}, {transform_indices = @transform_4, window_bounds = array<i64: 1, 8, 128>}, {transform_indices = @transform_5, window_bounds = array<i64: 1, 128, 128>}]} {
    %c0 = arith.constant 0 : index
    %c0_0 = arith.constant 0 : index
    %c0_1 = arith.constant 0 : index
    %0 = vector.load %arg2[%c0, %c0_0, %c0_1] : memref<1x8x128xf32, #tpu.memory_space<vmem>>, vector<1x8x128xf32>
    %1 = vector.shape_cast %0 : vector<1x8x128xf32> to vector<8x128xf32>
    %c0_2 = arith.constant 0 : index
    %c0_3 = arith.constant 0 : index
    %2 = vector.load %arg4[%c0_2, %c0_3] : memref<2x128xf32, #tpu.memory_space<vmem>>, vector<1x128xf32>
    %c1 = arith.constant 1 : index
    %c0_4 = arith.constant 0 : index
    %3 = vector.load %arg4[%c1, %c0_4] : memref<2x128xf32, #tpu.memory_space<vmem>>, vector<1x128xf32>
    %4 = arith.mulf %1, %1 : vector<8x128xf32>
    %cst = arith.constant dense<0.000000e+00> : vector<8xf32>
    %5 = vector.multi_reduction <add>, %4, %cst [1] : vector<8x128xf32> to vector<8xf32>
    %6 = vector.shape_cast %5 : vector<8xf32> to vector<8x1xf32>
    %c0_5 = arith.constant 0 : index
    %c0_6 = arith.constant 0 : index
    %7 = vector.load %arg3[%c0_5, %c0_6] : memref<128x128xf32, #tpu.memory_space<vmem>>, vector<128x128xf32>
    %cst_7 = arith.constant dense<0.000000e+00> : vector<8x128xf32>
    %8 = tpu.matmul %1, %7, %cst_7 {dimension_numbers = #tpu.dot_dimension_numbers<[1], [0], [0], [1], [0, 0, 1, 1], [], []>} : vector<8x128xf32>, vector<128x128xf32>, vector<8x128xf32> -> vector<8x128xf32>
    %9 = vector.broadcast %6 : vector<8x1xf32> to vector<8x128xf32>
    %10 = vector.broadcast %2 : vector<1x128xf32> to vector<8x128xf32>
    %11 = arith.mulf %9, %10 : vector<8x128xf32>
    %12 = arith.addf %11, %8 : vector<8x128xf32>
    %13 = vector.broadcast %3 : vector<1x128xf32> to vector<8x128xf32>
    %14 = arith.addf %12, %13 : vector<8x128xf32>
    %15 = math.exp %14 : vector<8x128xf32>
    %cst_8 = arith.constant dense<0.000000e+00> : vector<8xf32>
    %16 = vector.multi_reduction <add>, %15, %cst_8 [1] : vector<8x128xf32> to vector<8xf32>
    %17 = vector.shape_cast %16 : vector<8xf32> to vector<8x1xf32>
    %cst_9 = arith.constant 9.99999993E-9 : f32
    %18 = vector.broadcast %cst_9 : f32 to vector<8x1xf32>
    %19 = arith.addf %17, %18 : vector<8x1xf32>
    %20 = tpu.reciprocal %19 {approx = true} : vector<8x1xf32> -> vector<8x1xf32>
    %21 = vector.broadcast %20 : vector<8x1xf32> to vector<8x128xf32>
    %22 = arith.mulf %15, %21 : vector<8x128xf32>
    %c0_10 = arith.constant 0 : index
    %c0_11 = arith.constant 0 : index
    %c0_12 = arith.constant 0 : index
    %23 = vector.load %arg6[%c0_10, %c0_11, %c0_12] : memref<1x8x128xf32, #tpu.memory_space<vmem>>, vector<1x8x128xf32>
    %24 = vector.shape_cast %23 : vector<1x8x128xf32> to vector<8x128xf32>
    %25 = vector.shape_cast %22 : vector<8x128xf32> to vector<1x8x128xf32>
    tpu.vector_store %arg6[%c0_10, %c0_11, %c0_12], %25 {strides = array<i32>} : memref<1x8x128xf32, #tpu.memory_space<vmem>>, vector<1x8x128xf32>,
    %c0_i32 = arith.constant 0 : i32
    %26 = arith.cmpi eq, %arg1, %c0_i32 : i32
    %27 = arith.extui %26 : i1 to i32
    %c0_i32_13 = arith.constant 0 : i32
    %28 = arith.cmpi ne, %27, %c0_i32_13 : i32
    scf.if %28 {
      %cst_21 = arith.constant 0.000000e+00 : f32
      %36 = vector.broadcast %cst_21 : f32 to vector<128x128xf32>
      %c0_22 = arith.constant 0 : index
      %c0_23 = arith.constant 0 : index
      %37 = vector.load %arg8[%c0_22, %c0_23] : memref<128x128xf32, #tpu.memory_space<vmem>>, vector<128x128xf32>
      tpu.vector_store %arg8[%c0_22, %c0_23], %36 {strides = array<i32>} : memref<128x128xf32, #tpu.memory_space<vmem>>, vector<128x128xf32>,
    } else {
    }
    %c0_14 = arith.constant 0 : index
    %c0_15 = arith.constant 0 : index
    %29 = vector.load %arg8[%c0_14, %c0_15] : memref<128x128xf32, #tpu.memory_space<vmem>>, vector<128x128xf32>
    %cst_16 = arith.constant dense<0.000000e+00> : vector<128x128xf32>
    %30 = tpu.matmul %22, %1, %cst_16 {dimension_numbers = #tpu.dot_dimension_numbers<[0], [0], [1], [1], [0, 1, 1, 1], [], []>} : vector<8x128xf32>, vector<8x128xf32>, vector<128x128xf32> -> vector<128x128xf32>
    %31 = arith.addf %29, %30 : vector<128x128xf32>
    %c0_17 = arith.constant 0 : index
    %c0_18 = arith.constant 0 : index
    %32 = vector.load %arg8[%c0_17, %c0_18] : memref<128x128xf32, #tpu.memory_space<vmem>>, vector<128x128xf32>
    tpu.vector_store %arg8[%c0_17, %c0_18], %31 {strides = array<i32>} : memref<128x128xf32, #tpu.memory_space<vmem>>, vector<128x128xf32>,
    %c0_i32_19 = arith.constant 0 : i32
    %33 = arith.cmpi eq, %arg1, %c0_i32_19 : i32
    %34 = arith.extui %33 : i1 to i32
    %c0_i32_20 = arith.constant 0 : i32
    %35 = arith.cmpi ne, %34, %c0_i32_20 : i32
    scf.if %35 {
      %c0_21 = arith.constant 0 : index
      %c0_22 = arith.constant 0 : index
      %36 = vector.load %arg8[%c0_21, %c0_22] : memref<128x128xf32, #tpu.memory_space<vmem>>, vector<128x128xf32>
      %c0_23 = arith.constant 0 : index
      %c0_24 = arith.constant 0 : index
      %37 = vector.load %arg5[%c0_23, %c0_24] : memref<128x128xf32, #tpu.memory_space<vmem>>, vector<128x128xf32>
      %cst_25 = arith.constant dense<0.000000e+00> : vector<128x128xf32>
      %38 = tpu.matmul %36, %37, %cst_25 {dimension_numbers = #tpu.dot_dimension_numbers<[1], [0], [0], [1], [0, 0, 1, 1], [], []>} : vector<128x128xf32>, vector<128x128xf32>, vector<128x128xf32> -> vector<128x128xf32>
      %c0_26 = arith.constant 0 : index
      %c0_27 = arith.constant 0 : index
      %c0_28 = arith.constant 0 : index
      %39 = vector.load %arg7[%c0_26, %c0_27, %c0_28] : memref<1x128x128xf32, #tpu.memory_space<vmem>>, vector<1x128x128xf32>
      %40 = vector.shape_cast %39 : vector<1x128x128xf32> to vector<128x128xf32>
      %41 = vector.shape_cast %38 : vector<128x128xf32> to vector<1x128x128xf32>
      tpu.vector_store %arg7[%c0_26, %c0_27, %c0_28], %41 {strides = array<i32>} : memref<1x128x128xf32, #tpu.memory_space<vmem>>, vector<1x128x128xf32>,
    } else {
    }
    return
  }
  func.func @transform_0(%arg0: i32, %arg1: i32) -> (i32, i32, i32) {
    %c0_i32 = arith.constant 0 : i32
    %c0_i32_0 = arith.constant 0 : i32
    return %arg0, %arg1, %c0_i32 : i32, i32, i32
  }
  func.func @transform_1(%arg0: i32, %arg1: i32) -> (i32, i32) {
    %c0_i32 = arith.constant 0 : i32
    %c0_i32_0 = arith.constant 0 : i32
    %c0_i32_1 = arith.constant 0 : i32
    return %c0_i32, %c0_i32_0 : i32, i32
  }
  func.func @transform_2(%arg0: i32, %arg1: i32) -> (i32, i32) {
    %c0_i32 = arith.constant 0 : i32
    %c0_i32_0 = arith.constant 0 : i32
    %c0_i32_1 = arith.constant 0 : i32
    return %c0_i32, %c0_i32_0 : i32, i32
  }
  func.func @transform_3(%arg0: i32, %arg1: i32) -> (i32, i32) {
    %c0_i32 = arith.constant 0 : i32
    %c0_i32_0 = arith.constant 0 : i32
    %c0_i32_1 = arith.constant 0 : i32
    return %c0_i32, %c0_i32_0 : i32, i32
  }
  func.func @transform_4(%arg0: i32, %arg1: i32) -> (i32, i32, i32) {
    %c0_i32 = arith.constant 0 : i32
    %c0_i32_0 = arith.constant 0 : i32
    return %arg0, %arg1, %c0_i32 : i32, i32, i32
  }
  func.func @transform_5(%arg0: i32, %arg1: i32) -> (i32, i32, i32) {
    %c0_i32 = arith.constant 0 : i32
    %c0_i32_0 = arith.constant 0 : i32
    %c0_i32_1 = arith.constant 0 : i32
    return %arg0, %c0_i32, %c0_i32_0 : i32, i32, i32
  }
}

module attributes {stable_mosaic.version = 11 : i64} {
  func.func @_phase2_kernel(%arg0: i32, %arg1: i32, %arg2: memref<1x8x128xf32, #tpu.memory_space<vmem>>, %arg3: memref<1x128x128xf32, #tpu.memory_space<vmem>>, %arg4: memref<1x8x128xf32, #tpu.memory_space<vmem>>) attributes {dimension_semantics = [#tpu.dimension_semantics<parallel>, #tpu.dimension_semantics<parallel>], iteration_bounds = array<i64: 2, 1>, scalar_prefetch = 0 : i64, scratch_operands = 0 : i64, tpu.core_type = #tpu.core_type<tc>, window_params = [{transform_indices = @transform_0, window_bounds = array<i64: 1, 8, 128>}, {transform_indices = @transform_1, window_bounds = array<i64: 1, 128, 128>}, {transform_indices = @transform_2, window_bounds = array<i64: 1, 8, 128>}]} {
    %c0 = arith.constant 0 : index
    %c0_0 = arith.constant 0 : index
    %c0_1 = arith.constant 0 : index
    %0 = vector.load %arg2[%c0, %c0_0, %c0_1] : memref<1x8x128xf32, #tpu.memory_space<vmem>>, vector<1x8x128xf32>
    %1 = vector.shape_cast %0 : vector<1x8x128xf32> to vector<8x128xf32>
    %c0_2 = arith.constant 0 : index
    %c0_3 = arith.constant 0 : index
    %c0_4 = arith.constant 0 : index
    %2 = vector.load %arg3[%c0_2, %c0_3, %c0_4] : memref<1x128x128xf32, #tpu.memory_space<vmem>>, vector<1x128x128xf32>
    %3 = vector.shape_cast %2 : vector<1x128x128xf32> to vector<128x128xf32>
    %cst = arith.constant dense<0.000000e+00> : vector<8x128xf32>
    %4 = tpu.matmul %1, %3, %cst {dimension_numbers = #tpu.dot_dimension_numbers<[1], [0], [0], [1], [0, 0, 1, 1], [], []>} : vector<8x128xf32>, vector<128x128xf32>, vector<8x128xf32> -> vector<8x128xf32>
    %c0_5 = arith.constant 0 : index
    %c0_6 = arith.constant 0 : index
    %c0_7 = arith.constant 0 : index
    %5 = vector.load %arg4[%c0_5, %c0_6, %c0_7] : memref<1x8x128xf32, #tpu.memory_space<vmem>>, vector<1x8x128xf32>
    %6 = vector.shape_cast %5 : vector<1x8x128xf32> to vector<8x128xf32>
    %7 = vector.shape_cast %4 : vector<8x128xf32> to vector<1x8x128xf32>
    tpu.vector_store %arg4[%c0_5, %c0_6, %c0_7], %7 {strides = array<i32>} : memref<1x8x128xf32, #tpu.memory_space<vmem>>, vector<1x8x128xf32>,
    return
  }
  func.func @transform_0(%arg0: i32, %arg1: i32) -> (i32, i32, i32) {
    %c0_i32 = arith.constant 0 : i32
    %c0_i32_0 = arith.constant 0 : i32
    return %arg0, %arg1, %c0_i32 : i32, i32, i32
  }
  func.func @transform_1(%arg0: i32, %arg1: i32) -> (i32, i32, i32) {
    %c0_i32 = arith.constant 0 : i32
    %c0_i32_0 = arith.constant 0 : i32
    %c0_i32_1 = arith.constant 0 : i32
    return %arg0, %c0_i32, %c0_i32_0 : i32, i32, i32
  }
  func.func @transform_2(%arg0: i32, %arg1: i32) -> (i32, i32, i32) {
    %c0_i32 = arith.constant 0 : i32
    %c0_i32_0 = arith.constant 0 : i32
    return %arg0, %arg1, %c0_i32 : i32, i32, i32
  }
}

</mosaic_0001>

<bundles_post_ra>
// kernel: _splat_attention_impl.3
= control target key start
LH: loop header
LB: loop body
LE: loop exit
PB: predicated region body
PF: predicated region fallthrough
CT: control target
= control target key end

     0   :  { %7 = vsyncpa [#allocation3], 0  ;;  %s1007_s0 = inlined_call_operand.hbm [shape: f32[2,8,128], index: 0, kind: input, shape index: {}]   ;;  %s1008_s1 = inlined_call_operand.hbm [shape: f32[2,128,128], index: 1, kind: input, shape index: {}]   ;;  %s1009_s2 = inlined_call_operand.hbm [shape: f32[2,8,128], index: 2, kind: output, shape index: {}]  }
   0x1   :  { %9 = vsyncpa [#allocation3 + $0x1], 0 }
   0x2   :  { %10 = vsyncpa [#allocation6], 0 }
   0x3   :  { %12 = vsyncpa [#allocation6 + $0x1], 0 }
   0x4   :  { %13 = vsyncpa [#allocation4], 0 }
   0x5   :  { %15 = vsyncpa [#allocation4 + $0x1], 0  ;;  %s759_s9 = smov 0   ;;  %s761_s10 = smov 0  }
   0x6   :  { %s763_s11 = smov 0   ;;  %s765_s12 = smov 0  }
   0x7   :  { %s767_s13 = smov 0   ;;  %s769_s14 = smov 0  }
   0x8 LB: > { %s422_s15 = sadd.s32 4294967295, %s734_s14   ;;  %s423_s16 = sadd.s32 4294967294, %s734_s14   ;;  %s734_s14 = sphi %s769_s14, %s21_s14   ;;  %s730_s13 = sphi %s767_s13, %s1028_s13   ;;  %s726_s12 = sphi %s765_s12, %s1027_s12   ;;  %s722_s11 = sphi %s763_s11, %s1026_s11   ;;  %s718_s10 = sphi %s761_s10, %s1025_s10   ;;  %s714_s9 = sphi %s759_s9, %s1024_s9  }
   0x9   : > { %s33_s17 = sadd.s32 1, %s730_s13  ;;  %s42_s18 = sadd.s32 1, %s722_s11 }
   0xa   : > { %p35_p0 = scmp.ge.s32.totalorder %s33_s17, 2  ;;  %p49_p1 = scmp.ne.s32.totalorder %s722_s11, %s718_s10 }
   0xb   : > { %p50_p2 = scmp.eq.s32.totalorder %s734_s14, 0  ;;  %p55_p3 = scmp.ne.s32.totalorder %s718_s10, %s714_s9 }
   0xc   : > { %s1030_s17 = smov (%p35_p0, %s33_s17), 0  ;;  %p56_p5 = scmp.eq.s32.totalorder %s422_s15, 0 }
   0xd   : > { %p800_p4 = por %p50_p2, %p49_p1  ;;  %s37_s20 = ssub.s32 %s730_s13, %s1030_s17 }
   0xe   : > { %p107_p6 = scmp.eq.s32.totalorder %s422_s15, 1  ;;  %p40_p7 = scmp.eq.s32.totalorder %s37_s20, 0 }
   0xf   : > { %p806_p8 = por %p56_p5, %p55_p3  ;;  %p113_p10 = scmp.eq.s32.totalorder %s423_s16, 1 }
  0x10   : > { %p810_p9 = por %p107_p6, %p49_p1  ;;  %p533_p13 = scmp.lt.s32.totalorder %s734_s14, 2 }
  0x11   : > { %s1013_s21 = scalar_select %p806_p8, 1, 0 }
  0x12   : > { %s1014_s22 = scalar_select %p810_p9, 1, 0 }
  0x13   : > { %s815_s23 = scalar_select %p40_p7, %s722_s11, %s42_s18  }
  0x14   : > { %p817_p11 = por %p113_p10, %p55_p3  ;;  %s824_s25 = sand.u32 1, %s722_s11  }
  0x15   : > { %s426_s26 = sshll.u32 %s824_s25, 3  ;;  %s427_s27 = sshll.u32 %s730_s13, 7 }
  0x16   : > { %s1015_s24 = scalar_select %p817_p11, 1, 0 }
  0x17   : > { %s831_s30 = scalar_lea.hbm %s1007_s0, %s427_s27  ;;  %s137_s3 = scalar_lea.vmem [#allocation2], %s426_s26 }
  0x18   : > { %s145_s4 = sshll.u32 %s137_s3, 4  ;;  %p837_p0 = pnand %p533_p13, %p800_p4  ;;  %s833_s4 = int_to_ptr.vmem [resolvable:$true] %s145_s4 }
  0x19   : > { %s134_s6 = scalar_lea.sflag [#allocation3], %s824_s25  ;;  %s588_s7 = scalar_lea.hbm %s831_s30, 128 }
  0x1a   : > { %p589_p3 = scmp.ne.s32.totalorder %s831_s30, %s588_s7  ;;  %p590_p5 = pneg %p837_p0 }
  0x1b   : > { %s593_s16 = scalar_lea.hbm %s1007_s0, 256  ;;  %p594_p4 = scmp.lt.u32.totalorder %s831_s30, %s1007_s0 }
  0x1c   : > { %p591_p6 = pnand %p590_p5, %p589_p3  ;;  %p595_p10 = scmp.lt.u32.totalorder %s593_s16, %s588_s7 }
  0x1d   : > { %p597_p12 = scmp.lt.u32.totalorder %s588_s7, %s831_s30 }
  0x1e   : > { %p592_p7 = pneg %p591_p6  ;;  %p596_p13 = por %p595_p10, %p594_p4 }
  0x20   : > { %p598_p1 = por %p597_p12, %p596_p13 }
  0x22   : > { %p599_p2 = pnand %p598_p1, %p592_p7 }
  0x24   : > { %602 = shalt.err (!%p599_p2)
}
  0x25   : > { %s603_s20 = scalar_lea.vmem %s833_s4, 128  ;;  %s736_s26 = smov [#allocation2]  }
  0x26   : > { %p604_p3 = scmp.ne.s32.totalorder %s833_s4, %s603_s20  ;;  %s608_s27 = sshll.u32 %s736_s26, 4  ;;  %s609_s27 = int_to_ptr.vmem [resolvable:$false] %s608_s27 }
  0x27   : > { %s610_s28 = scalar_lea.vmem %s609_s27, 256  ;;  %p611_p9 = scmp.lt.s32.totalorder %s833_s4, %s609_s27 }
  0x28   : > { %p606_p6 = pnand %p604_p3, %p590_p5  ;;  %p612_p4 = scmp.lt.s32.totalorder %s610_s28, %s603_s20 }
  0x2a   : > { %p607_p11 = pneg %p606_p6  ;;  %p613_p10 = por %p612_p4, %p611_p9 }
  0x2c   : > { %p614_p12 = pnand %p613_p10, %p607_p11 }
  0x2e   : > { %617 = shalt.err (!%p614_p12)
}
  0x2f   : > { %525 = dma.hbm_to_vmem [thread:$0]  (!%p837_p0), %s831_s30, 128, %s833_s4, %s134_s6  }
  0x30   : > { %p1017_p1 = scmp.lt.s32.totalorder %s734_s14, 3  ;;  %p1018_p2 = scmp.ge.s32.totalorder %s734_s14, 1 }
  0x31   : > { %s428_s3 = sshll.u32 %s824_s25, 7  ;;  %s439_s7 = sshll.u32 %s730_s13, 11 }
  0x32   : > { %p873_p7 = pnand %p1018_p2, %p1017_p1  ;;  %s882_s16 = scalar_lea.hbm %s1008_s1, %s439_s7 }
  0x33   : > { %s156_s18 = scalar_lea.vmem [#allocation5], %s428_s3  ;;  %s153_s30 = scalar_lea.sflag [#allocation6], %s824_s25 }
  0x34   : > { %s163_s19 = sshll.u32 %s156_s18, 4  ;;  %s618_s4 = scalar_lea.hbm %s882_s16, 2048  ;;  %s884_s19 = int_to_ptr.vmem [resolvable:$true] %s163_s19 }
  0x35   : > { %p619_p9 = scmp.ne.s32.totalorder %s882_s16, %s618_s4  ;;  %s623_s26 = scalar_lea.hbm %s1008_s1, 4096 }
  0x36   : > { %p624_p3 = scmp.lt.u32.totalorder %s882_s16, %s1008_s1  ;;  %p625_p6 = scmp.lt.u32.totalorder %s623_s26, %s618_s4 }
  0x37   : > { %p621_p11 = pnand %p619_p9, %p590_p5  ;;  %p627_p10 = scmp.lt.u32.totalorder %s618_s4, %s882_s16 }
  0x38   : > { %p626_p4 = por %p625_p6, %p624_p3 }
  0x39   : > { %p622_p13 = pneg %p621_p11 }
  0x3a   : > { %p628_p12 = por %p627_p10, %p626_p4 }
  0x3c   : > { %p629_p1 = pnand %p628_p12, %p622_p13 }
  0x3e   : > { %632 = shalt.err (!%p629_p1)
}
  0x3f   : > { %s633_s3 = scalar_lea.vmem %s884_s19, 2048  ;;  %s737_s7 = smov [#allocation5]  }
  0x40   : > { %p634_p2 = scmp.ne.s32.totalorder %s884_s19, %s633_s3  ;;  %s638_s8 = sshll.u32 %s737_s7, 4  ;;  %s639_s8 = int_to_ptr.vmem [resolvable:$false] %s638_s8 }
  0x41   : > { %s640_s15 = scalar_lea.vmem %s639_s8, 4096  ;;  %p641_p8 = scmp.lt.s32.totalorder %s884_s19, %s639_s8 }
  0x42   : > { %p636_p9 = pnand %p634_p2, %p590_p5  ;;  %p642_p3 = scmp.lt.s32.totalorder %s640_s15, %s633_s3 }
  0x44   : > { %p637_p11 = pneg %p636_p9  ;;  %p643_p6 = por %p642_p3, %p641_p8 }
  0x46   : > { %p644_p4 = pnand %p643_p6, %p637_p11 }
  0x48   : > { %647 = shalt.err (!%p644_p4)
}
  0x49   : > { %s738_s18 = smov 128   ;;  %s739_s4 = smov 8  }
  0x4a   : > { %528 = dma.hbm_to_vmem [thread:$0]  (!%p837_p0), %s882_s16, 2048, %s884_s19, %s153_s30, %s738_s18, %s738_s18, %s739_s4  }
  0x4b   : > { %175 = sbr.rel (%p873_p7) target bundleno = 346 (0x15a), region = 28  ;;  %s915_s6 = sand.u32 (!%p873_p7), 1, %s718_s10  }
  0x4c   : > { %s432_s20 = sshll.u32 (!%p873_p7), %s915_s6, 3  ;;  %s178_s26 = scalar_lea.sflag (!%p873_p7), [#allocation3], %s915_s6 }
  0x4d   : > { %s921_s27 = scalar_lea.vmem (!%p873_p7), [#allocation2], %s432_s20  ;;  %p1020_p8 = scmp.ne.s32.totalorder (!%p873_p7), %s1013_s21, 0 }
  0x52   : > { %701 = dma.done.wait (%p1020_p8), %s178_s26, 128  }
  0x53   : > { %703 = vsyncadd (%p1020_p8), %s178_s26, 4294967168  ;;  %s433_s25 = sshll.u32 %s915_s6, 7  ;;  %s187_s5 = scalar_lea.sflag [#allocation6], %s915_s6 }
  0x54   : > { %s929_s29 = scalar_lea.vmem [#allocation5], %s433_s25 }
  0x55   : > { %705 = dma.done.wait (%p1020_p8), %s187_s5, 2048  }
  0x56   : > { %707 = vsyncadd (%p1020_p8), %s187_s5, 4294965248  ;;  %v740_v0 = vmov 0.0|0.0   ;;  %vm741_vm0 = vmmov 0   ;;  %v742_v1 = vmov 0.0   ;;  %v217_v2 = vld [vmem:[%s929_s29] sm:$0xff]  ;;  %v218_v3 = vld [vmem:[%s929_s29 + $0x8] sm:$0xff] }
  0x57   : > { %492 = vmatprep.subr.bf16.mxu0 %v740_v0  ;;  %489 = vmatprep.mubr.msk.f32.mxu0 %vm741_vm0, %v742_v1  ;;  %v219_v4 = vld [vmem:[%s929_s29 + $0x10] sm:$0xff]  ;;  %v493_v5 = vpack.c.bf16 %v218_v3, %v217_v2  ;;  %v220_v6 = vld [vmem:[%s929_s29 + $0x18] sm:$0xff]  ;;  %v221_v8 = vld [vmem:[%s929_s29 + $0x20] sm:$0xff]  ;;  %s215_s21 = scalar_lea.vmem [#allocation7], %s432_s20  ;;  %s436_s19 = sshll.u32 %s726_s12, 7 }
  0x58   : > { %v496_v7 = vpack.c.bf16 %v220_v6, %v219_v4  ;;  %v222_v9 = vld [vmem:[%s929_s29 + $0x28] sm:$0xff]  ;;  %v223_v11 = vld [vmem:[%s929_s29 + $0x30] sm:$0xff]  ;;  %v224_v12 = vld [vmem:[%s929_s29 + $0x38] sm:$0xff]  ;;  %s319_s16 = sshll.u32 %s215_s21, 4  ;;  %s960_s3 = scalar_lea.hbm %s1009_s2, %s436_s19  ;;  %s955_s16 = int_to_ptr.vmem [resolvable:$true] %s319_s16 }
  0x59   : > { %494 = vmatpush3.bf16.msra.mxu0 %v493_v5  ;;  %v499_v10 = vpack.c.bf16 %v222_v9, %v221_v8  ;;  %v502_v13 = vpack.c.bf16 %v224_v12, %v223_v11  ;;  %v225_v14 = vld [vmem:[%s929_s29 + $0x40] sm:$0xff]  ;;  %v226_v15 = vld [vmem:[%s929_s29 + $0x48] sm:$0xff]  ;;  %v227_v17 = vld [vmem:[%s929_s29 + $0x50] sm:$0xff]  ;;  %s305_s7 = scalar_lea.sflag [#allocation4], %s915_s6  ;;  %s648_s8 = scalar_lea.vmem %s955_s16, 128 }
  0x5a   : > { %495 = vmatprep.subr.bf16.mxu0 %v740_v0  ;;  %v505_v16 = vpack.c.bf16 %v226_v15, %v225_v14  ;;  %v228_v18 = vld [vmem:[%s929_s29 + $0x58] sm:$0xff]  ;;  %v229_v20 = vld [vmem:[%s929_s29 + $0x60] sm:$0xff]  ;;  %v230_v21 = vld [vmem:[%s929_s29 + $0x68] sm:$0xff]  ;;  %p649_p0 = scmp.ne.s32.totalorder %s955_s16, %s648_s8  ;;  %p1021_p5 = scmp.ne.s32.totalorder %s1014_s22, 0 }
  0x5b   : > { %v508_v19 = vpack.c.bf16 %v228_v18, %v227_v17  ;;  %v511_v22 = vpack.c.bf16 %v230_v21, %v229_v20  ;;  %v231_v23 = vld [vmem:[%s929_s29 + $0x70] sm:$0xff]  ;;  %v232_v24 = vld [vmem:[%s929_s29 + $0x78] sm:$0xff]  ;;  %s743_s12 = smov [#allocation7]  }
  0x5c   : > { %v514_v25 = vpack.c.bf16 %v232_v24, %v231_v23  ;;  %v216_v26 = vld [vmem:[%s921_s27] sm:$0xff]  ;;  %p650_p7 = pnand %p649_p0, %p1021_p5  ;;  %s652_s15 = sshll.u32 %s743_s12, 4  ;;  %s653_s15 = int_to_ptr.vmem [resolvable:$false] %s652_s15 }
  0x5d   : > { %497 = vmatpush3.bf16.msra.mxu0 %v496_v7  ;;  %s654_s18 = scalar_lea.vmem %s653_s15, 256  ;;  %p655_p10 = scmp.lt.s32.totalorder %s955_s16, %s653_s15 }
  0x5e   : > { %498 = vmatprep.subr.bf16.mxu0 %v740_v0  ;;  %p651_p13 = pneg %p650_p7  ;;  %p656_p12 = scmp.lt.s32.totalorder %s654_s18, %s648_s8 }
  0x60   : > { %p657_p1 = por %p656_p12, %p655_p10 }
  0x61   : > { %500 = vmatpush3.bf16.msra.mxu0 %v499_v10 }
  0x62   : > { %501 = vmatprep.subr.bf16.mxu0 %v740_v0  ;;  %p658_p2 = pnand %p657_p1, %p651_p13 }
  0x65   : > { %503 = vmatpush3.bf16.msra.mxu0 %v502_v13 }
  0x66   : > { %504 = vmatprep.subr.bf16.mxu0 %v740_v0 }
  0x69   : > { %506 = vmatpush3.bf16.msra.mxu0 %v505_v16 }
  0x6a   : > { %507 = vmatprep.subr.bf16.mxu0 %v740_v0 }
  0x6d   : > { %509 = vmatpush3.bf16.msra.mxu0 %v508_v19 }
  0x6e   : > { %510 = vmatprep.subr.bf16.mxu0 %v740_v0 }
  0x71   : > { %512 = vmatpush3.bf16.msra.mxu0 %v511_v22 }
  0x72   : > { %513 = vmatprep.subr.bf16.mxu0 %v740_v0 }
  0x75   : > { %515 = vmatpush3.bf16.msra.mxu0 %v514_v25 }
  0x78   : > { %490 = vmatmul.mubr.f32.vlgmr.msra.gmra.mrb[0].mxu0 %v216_v26 }
 0x14b   : > { %v299_v27 = vpop.f32.mrb[0].mxu0 }
 0x14c   : > { %303 = vst [vmem:[%s215_s21] sm:$0xff] %v299_v27  ;;  %v491_v28 = vpop.f32.mrb[1].mxu0 }
 0x14d   : > { %661 = shalt.err (!%p658_p2)
}
 0x14e   : > { %s662_s4 = scalar_lea.hbm %s960_s3, 128  ;;  %s666_s26 = scalar_lea.hbm %s1009_s2, 256 }
 0x14f   : > { %p663_p9 = scmp.ne.s32.totalorder %s960_s3, %s662_s4  ;;  %p667_p6 = scmp.lt.u32.totalorder %s960_s3, %s1009_s2 }
 0x150   : > { %p668_p4 = scmp.lt.u32.totalorder %s666_s26, %s662_s4  ;;  %p670_p0 = scmp.lt.u32.totalorder %s662_s4, %s960_s3 }
 0x151   : > { %p664_p11 = pnand %p663_p9, %p1021_p5 }
 0x152   : > { %p669_p8 = por %p668_p4, %p667_p6 }
 0x153   : > { %p665_p3 = pneg %p664_p11 }
 0x154   : > { %p671_p7 = por %p670_p0, %p669_p8 }
 0x156   : > { %p672_p13 = pnand %p671_p7, %p665_p3 }
 0x158   : > { %675 = shalt.err (!%p672_p13)
}
 0x159   : > { %520 = dma.vmem_to_hbm [thread:$0]  (%p1021_p5), %s955_s16, 128, %s960_s3, %s305_s7  }
 0x15a PF: > { %s331_s5 = sand.u32 1, %s714_s9   ;;  %p1022_p10 = scmp.ne.s32.totalorder %s1015_s24, 0 }
 0x15b   : > { %p1023_p12 = scmp.ge.s32.totalorder %s734_s14, 2  ;;  %s332_s29 = scalar_lea.sflag [#allocation4], %s331_s5 }
 0x15d   : > { %p530_p1 = pnand %p1023_p12, %p1022_p10 }
 0x15f   : > { %709 = dma.done.wait (!%p530_p1), %s332_s29, 128  }
 0x160   : > { %711 = vsyncadd (!%p530_p1), %s332_s29, 4294967168  ;;  %s21_s14 = sadd.s32 1, %s734_s14   ;;  %s1024_s9 = smov %s718_s10 }
 0x161   : > { %p18_p2 = scmp.ge.s32.totalorder %s21_s14, 4   ;;  %s1025_s10 = smov %s722_s11 }
 0x162   : > { %s1026_s11 = smov %s815_s23  ;;  %s1027_s12 = smov %s730_s13 }
 0x163   : > { %s1028_s13 = smov %s1030_s17  ;;  %20 = sbr.rel (!%p18_p2) target bundleno = 8 (0x8), region = 86 }
 0x16a   :  { %337 = vsyncpa [#allocation3], 1 }
 0x16b   :  { %339 = vsyncpa [#allocation3 + $0x1], 1 }
 0x16c   :  { %340 = vsyncpa [#allocation6], 1 }
 0x16d   :  { %342 = vsyncpa [#allocation6 + $0x1], 1 }
 0x16e   :  { %343 = vsyncpa [#allocation4], 1 }
 0x16f   :  { %345 = vsyncpa [#allocation4 + $0x1], 1 }

// kernel: _splat_attention_impl.2
= control target key start
LH: loop header
LB: loop body
LE: loop exit
PB: predicated region body
PF: predicated region fallthrough
CT: control target
= control target key end

     0   :  { %11 = vsyncpa [#allocation4], 0  ;;  %s2110_s0 = inlined_call_operand.hbm [shape: f32[2,8,128], index: 0, kind: input, shape index: {}]   ;;  %s2111_s1 = inlined_call_operand.hbm [shape: f32[128,128], index: 1, kind: input, shape index: {}]   ;;  %s2112_s2 = inlined_call_operand.hbm [shape: f32[2,128], index: 2, kind: input, shape index: {}]   ;;  %s2113_s3 = inlined_call_operand.hbm [shape: f32[128,128], index: 3, kind: input, shape index: {}]   ;;  %s2114_s4 = inlined_call_operand.hbm [shape: f32[2,8,128], index: 4, kind: output, shape index: {0}]   ;;  %s2115_s5 = inlined_call_operand.hbm [shape: f32[2,128,128], index: 5, kind: output, shape index: {1}]  }
   0x1   :  { %13 = vsyncpa [#allocation4 + $0x1], 0 }
   0x2   :  { %14 = vsyncpa [#allocation7], 0 }
   0x3   :  { %15 = vsyncpa [#allocation10], 0 }
   0x4   :  { %16 = vsyncpa [#allocation5], 0 }
   0x5   :  { %18 = vsyncpa [#allocation5 + $0x1], 0 }
   0x6   :  { %19 = vsyncpa [#allocation13], 0 }
   0x7   :  { %21 = vsyncpa [#allocation13 + $0x1], 0  ;;  %s1759_s18 = smov 0   ;;  %s1761_s19 = smov 0  }
   0x8   :  { %s1763_s20 = smov 0   ;;  %s1765_s21 = smov 0  }
   0x9   :  { %s1767_s22 = smov 0   ;;  %s1769_s23 = smov 0  }
   0xa LB: > { %2122 = sst [smem:[#allocation19_spill]] %s1694_s18  ;;  %s1088_s24 = sadd.s32 4294967295, %s1714_s23   ;;  %s1714_s23 = sphi %s1769_s23, %s27_s23   ;;  %s1710_s22 = sphi %s1767_s22, %s2145_s22   ;;  %s1706_s21 = sphi %s1765_s21, %s2144_s21   ;;  %s1702_s20 = sphi %s1763_s20, %s2143_s20   ;;  %s1698_s19 = sphi %s1761_s19, %s2142_s19   ;;  %s1694_s18 = sphi %s1759_s18, %s2141_s18  }
   0xb   : > { %s1089_s25 = sadd.s32 4294967294, %s1714_s23   ;;  %p61_p0 = scmp.ne.s32.totalorder %s1698_s19, %s1694_s18 }
   0xc   : > { %p1793_p1 = scmp.eq.s32.totalorder %s1088_s24, 0  ;;  %p1797_p2 = scmp.eq.s32.totalorder %s1088_s24, 1 }
   0xd   : > { %p156_p3 = scmp.eq.s32.totalorder %s1089_s25, 1  ;;  %p1090_p5 = scmp.ge.s32.totalorder %s1714_s23, 1 }
   0xe   : > { %s2123_s26 = scalar_select %p1793_p1, 1, 0 }
   0xf   : > { %s2124_s27 = scalar_select %p1797_p2, 1, 0 }
  0x10   : > { %p1803_p4 = por %p1793_p1, %p61_p0  ;;  %p1808_p6 = por %p156_p3, %p61_p0 }
  0x11   : > { %p189_p7 = scmp.lt.s32.totalorder %s1714_s23, 3  ;;  %s1716_s6 = smov [#allocation6]  }
  0x12   : > { %s2125_s28 = scalar_select %p1803_p4, 1, 0 }
  0x13   : > { %s2126_s29 = scalar_select %p1808_p6, 1, 0 }
  0x14   : > { %p1813_p8 = pnand %p1090_p5, %p189_p7  ;;  %s201_s7 = sshll.u32 %s1716_s6, 4  ;;  %s1817_s7 = int_to_ptr.vmem [resolvable:$true] %s201_s7 }
  0x15   : > { %2127 = sst [smem:[#allocation20_spill]] %s2126_s29  ;;  %s1717_s9 = smov [#allocation8]  }
  0x16   : > { %s2128_s30 = scalar_select %p1813_p8, 1, 0 }
  0x17   : > { %p1387_p9 = pneg %p1813_p8  ;;  %s215_s10 = sshll.u32 %s1717_s9, 4  ;;  %s1828_s10 = int_to_ptr.vmem [resolvable:$true] %s215_s10 }
  0x18   : > { %s1718_s11 = smov [#allocation9]   ;;  %s1478_s15 = scalar_lea.hbm %s2111_s1, 2048 }
  0x19   : > { %p1824_p11 = pnand %p1387_p9, %p1793_p1  ;;  %s1830_s12 = sshll.u32 %s1718_s11, 4  ;;  %s226_s12 = int_to_ptr.vmem [resolvable:$true] %s1830_s12 }
  0x1a   : > { %p1479_p12 = scmp.ne.s32.totalorder %s2111_s1, %s1478_s15  ;;  %p1485_p5 = scmp.lt.u32.totalorder %s1478_s15, %s2111_s1 }
  0x1b   : > { %p1840_p13 = pneg %p1824_p11 }
  0x1d   : > { %p1481_p0 = pnand %p1840_p13, %p1479_p12 }
  0x1f   : > { %p1482_p3 = pneg %p1481_p0 }
  0x21   : > { %p1487_p7 = pnand %p1485_p5, %p1482_p3 }
  0x23   : > { %1490 = shalt.err (!%p1487_p7)
}
  0x24   : > { %s1491_s9 = scalar_lea.vmem %s1817_s7, 2048  ;;  %p1499_p1 = scmp.lt.s32.totalorder %s1817_s7, %s1817_s7 }
  0x25   : > { %p1492_p9 = scmp.ne.s32.totalorder %s1817_s7, %s1491_s9  ;;  %p1500_p4 = scmp.lt.s32.totalorder %s1491_s9, %s1491_s9 }
  0x27   : > { %p1494_p10 = pnand %p1492_p9, %p1840_p13  ;;  %p1501_p12 = por %p1500_p4, %p1499_p1 }
  0x29   : > { %p1495_p6 = pneg %p1494_p10 }
  0x2b   : > { %p1502_p0 = pnand %p1501_p12, %p1495_p6 }
  0x2d   : > { %1505 = shalt.err (!%p1502_p0)
}
  0x2e   : > { %s1719_s11 = smov 128   ;;  %s1720_s13 = smov 8  }
  0x2f   : > { %1390 = dma.hbm_to_vmem [thread:$0]  (!%p1824_p11), %s2111_s1, 2048, %s1817_s7, [#allocation7], %s1719_s11, %s1719_s11, %s1720_s13  }
  0x30   : > { %s1506_s25 = scalar_lea.hbm %s2112_s2, 32 }
  0x31   : > { %p1507_p1 = scmp.ne.s32.totalorder %s2112_s2, %s1506_s25  ;;  %p1513_p10 = scmp.lt.u32.totalorder %s1506_s25, %s2112_s2 }
  0x33   : > { %p1509_p4 = pnand %p1507_p1, %p1840_p13 }
  0x35   : > { %p1510_p6 = pneg %p1509_p4 }
  0x37   : > { %p1515_p3 = pnand %p1513_p10, %p1510_p6 }
  0x39   : > { %1518 = shalt.err (!%p1515_p3)
}
  0x3a   : > { %s1519_s7 = scalar_lea.vmem %s1828_s10, 32  ;;  %p1527_p12 = scmp.lt.s32.totalorder %s1828_s10, %s1828_s10 }
  0x3b   : > { %p1520_p5 = scmp.ne.s32.totalorder %s1828_s10, %s1519_s7  ;;  %p1528_p0 = scmp.lt.s32.totalorder %s1519_s7, %s1519_s7 }
  0x3d   : > { %p1522_p7 = pnand %p1520_p5, %p1840_p13  ;;  %p1529_p1 = por %p1528_p0, %p1527_p12 }
  0x3f   : > { %p1523_p9 = pneg %p1522_p7 }
  0x41   : > { %p1530_p4 = pnand %p1529_p1, %p1523_p9 }
  0x43   : > { %1533 = shalt.err (!%p1530_p4)
}
  0x44   : > { %1393 = dma.hbm_to_vmem [thread:$0]  (!%p1824_p11), %s2112_s2, 32, %s1828_s10, [#allocation7]  }
  0x45   : > { %s1534_s16 = scalar_lea.hbm %s2113_s3, 2048 }
  0x46   : > { %p1535_p6 = scmp.ne.s32.totalorder %s2113_s3, %s1534_s16  ;;  %p1541_p5 = scmp.lt.u32.totalorder %s1534_s16, %s2113_s3 }
  0x48   : > { %p1537_p10 = pnand %p1535_p6, %p1840_p13 }
  0x4a   : > { %p1538_p3 = pneg %p1537_p10 }
  0x4c   : > { %p1543_p7 = pnand %p1541_p5, %p1538_p3 }
  0x4e   : > { %1546 = shalt.err (!%p1543_p7)
}
  0x4f   : > { %s1547_s7 = scalar_lea.vmem %s226_s12, 2048  ;;  %p1555_p1 = scmp.lt.s32.totalorder %s226_s12, %s226_s12 }
  0x50   : > { %p1548_p9 = scmp.ne.s32.totalorder %s226_s12, %s1547_s7  ;;  %p1556_p4 = scmp.lt.s32.totalorder %s1547_s7, %s1547_s7 }
  0x52   : > { %p1550_p12 = pnand %p1548_p9, %p1840_p13  ;;  %p1557_p8 = por %p1556_p4, %p1555_p1 }
  0x54   : > { %p1551_p0 = pneg %p1550_p12 }
  0x56   : > { %p1558_p2 = pnand %p1557_p8, %p1551_p0 }
  0x58   : > { %1561 = shalt.err (!%p1558_p2)
}
  0x59   : > { %1396 = dma.hbm_to_vmem [thread:$0]  (!%p1824_p11), %s2113_s3, 2048, %s226_s12, [#allocation10], %s1719_s11, %s1719_s11, %s1720_s13  }
  0x5a   : > { %s48_s24 = sadd.s32 1, %s1702_s20  ;;  %s39_s8 = sadd.s32 1, %s1710_s22 }
  0x5b   : > { %p55_p2 = scmp.ne.s32.totalorder %s1702_s20, %s1698_s19  ;;  %p41_p8 = scmp.ge.s32.totalorder %s39_s8, 2 }
  0x5c   : > { %p56_p13 = scmp.eq.s32.totalorder %s1714_s23, 0  ;;  %p2131_p6 = scmp.ne.s32.totalorder %s2124_s27, 0 }
  0x5d   : > { %p1411_p3 = scmp.lt.s32.totalorder %s1714_s23, 2  ;;  %s2147_s8 = smov (%p41_p8, %s39_s8), 0 }
  0x5e   : > { %p1916_p10 = por %p2131_p6, %p55_p2  ;;  %p57_p5 = por %p56_p13, %p55_p2 }
  0x5f   : > { %s239_s14 = sand.u32 1, %s1702_s20   ;;  %s43_s15 = ssub.s32 %s1710_s22, %s2147_s8 }
  0x60   : > { %p46_p7 = scmp.eq.s32.totalorder %s43_s15, 0  ;;  %s1095_s12 = sshll.u32 %s239_s14, 3 }
  0x61   : > { %s1096_s11 = sshll.u32 %s1710_s22, 7  ;;  %s243_s25 = scalar_lea.vmem [#allocation3], %s1095_s12 }
  0x62   : > { %s1928_s13 = scalar_select %p46_p7, %s1702_s20, %s48_s24  }
  0x63   : > { %s1933_s27 = scalar_lea.hbm %s2110_s0, %s1096_s11  ;;  %s251_s6 = sshll.u32 %s243_s25, 4  ;;  %s1935_s6 = int_to_ptr.vmem [resolvable:$true] %s251_s6 }
  0x64   : > { %p1939_p11 = pnand %p1411_p3, %p57_p5  ;;  %s240_s7 = scalar_lea.sflag [#allocation4], %s239_s14 }
  0x65   : > { %s1562_s10 = scalar_lea.hbm %s1933_s27, 128  ;;  %s1567_s15 = scalar_lea.hbm %s2110_s0, 256 }
  0x66   : > { %p1563_p9 = scmp.ne.s32.totalorder %s1933_s27, %s1562_s10  ;;  %p1564_p12 = pneg %p1939_p11 }
  0x67   : > { %p1568_p4 = scmp.lt.u32.totalorder %s1933_s27, %s2110_s0  ;;  %p1569_p2 = scmp.lt.u32.totalorder %s1567_s15, %s1562_s10 }
  0x68   : > { %p1565_p0 = pnand %p1564_p12, %p1563_p9  ;;  %p1571_p13 = scmp.lt.u32.totalorder %s1562_s10, %s1933_s27 }
  0x69   : > { %p1570_p8 = por %p1569_p2, %p1568_p4 }
  0x6a   : > { %p1566_p1 = pneg %p1565_p0 }
  0x6b   : > { %p1572_p6 = por %p1571_p13, %p1570_p8 }
  0x6d   : > { %p1573_p3 = pnand %p1572_p6, %p1566_p1 }
  0x6f   : > { %1576 = shalt.err (!%p1573_p3)
}
  0x70   : > { %s1577_s14 = scalar_lea.vmem %s1935_s6, 128  ;;  %s1721_s16 = smov [#allocation3]  }
  0x71   : > { %p1578_p5 = scmp.ne.s32.totalorder %s1935_s6, %s1577_s14  ;;  %s1582_s17 = sshll.u32 %s1721_s16, 4  ;;  %s1583_s17 = int_to_ptr.vmem [resolvable:$false] %s1582_s17 }
  0x72   : > { %s1584_s25 = scalar_lea.vmem %s1583_s17, 256  ;;  %p1585_p0 = scmp.lt.s32.totalorder %s1935_s6, %s1583_s17 }
  0x73   : > { %p1580_p7 = pnand %p1578_p5, %p1564_p12  ;;  %p1586_p4 = scmp.lt.s32.totalorder %s1584_s25, %s1577_s14 }
  0x75   : > { %p1581_p9 = pneg %p1580_p7  ;;  %p1587_p2 = por %p1586_p4, %p1585_p0 }
  0x77   : > { %p1588_p8 = pnand %p1587_p2, %p1581_p9 }
  0x79   : > { %1591 = shalt.err (!%p1588_p8)
}
  0x7a   : > { %1400 = dma.hbm_to_vmem [thread:$0]  (!%p1939_p11), %s1933_s27, 128, %s1935_s6, %s240_s7  }
  0x7b   : > { %p2134_p1 = scmp.ne.s32.totalorder %s2128_s30, 0 }
  0x7c   : > { %s1971_s10 = sand.u32 (!%p2134_p1), 1, %s1698_s19   ;;  %p2135_p12 = scmp.ne.s32.totalorder (!%p2134_p1), %s2125_s28, 0 }
  0x7d   : > { %260 = sbr.rel (%p2134_p1) target bundleno = 1190 (0x4a6), region = 36  ;;  %s1098_s18 = sshll.u32 (!%p2134_p1), %s1971_s10, 3 }
  0x7e   : > { %s263_s24 = scalar_lea.sflag (!%p2134_p1), [#allocation4], %s1971_s10  ;;  %s266_s15 = scalar_lea.vmem (!%p2134_p1), [#allocation3], %s1098_s18 }
  0x84   : > { %1673 = dma.done.wait (%p2135_p12), %s263_s24, 128  }
  0x85   : > { %1675 = vsyncadd (%p2135_p12), %s263_s24, 4294967168  ;;  %p2136_p11 = scmp.ne.s32.totalorder %s2123_s26, 0 }
  0x87   : > { %1677 = dma.done.wait (%p2136_p11), [#allocation7], 2080  }
  0x88   : > { %1679 = vsyncadd (%p2136_p11), [#allocation7], 4294965216 }
  0x89   : > { %1681 = dma.done.wait (%p2136_p11), [#allocation10], 2048  }
  0x8a   : > { %1683 = vsyncadd (%p2136_p11), [#allocation10], 4294965248  ;;  %v1722_v0 = vmov 0.0|0.0   ;;  %vm1723_vm0 = vmmov 0   ;;  %v1724_v1 = vmov 0.0   ;;  %v316_v2 = vld [vmem:[#allocation6] sm:$0xff] }
  0x8b   : > { %1313 = vmatprep.subr.bf16.mxu0 %v1722_v0  ;;  %1228 = vmatprep.mubr.msk.f32.mxu0 %vm1723_vm0, %v1724_v1  ;;  %v317_v3 = vld [vmem:[#allocation6 + $0x8] sm:$0xff]  ;;  %v318_v4 = vld [vmem:[#allocation6 + $0x10] sm:$0xff]  ;;  %v319_v6 = vld [vmem:[#allocation6 + $0x18] sm:$0xff]  ;;  %s1991_s26 = scalar_lea.vmem [#allocation11], %s1098_s18  ;;  %vm489_vm1 = vcmask 64512   ;;  %s1124_s28 = sshll.u32 %s1706_s21, 7 }
  0x8c   : > { %v1314_v5 = vpack.c.bf16 %v317_v3, %v316_v2  ;;  %v1317_v7 = vpack.c.bf16 %v319_v6, %v318_v4  ;;  %v320_v8 = vld [vmem:[#allocation6 + $0x20] sm:$0xff]  ;;  %v321_v9 = vld [vmem:[#allocation6 + $0x28] sm:$0xff]  ;;  %v310_v10 = vld [vmem:[%s266_s15] sm:$0xff]  ;;  %s931_s30 = sshll.u32 %s1991_s26, 4  ;;  %s2015_s9 = scalar_lea.hbm %s2114_s4, %s1124_s28  ;;  %s932_s30 = int_to_ptr.vmem [resolvable:$true] %s931_s30 }
  0x8d   : > { %v313_v11 = vmul.f32 %v310_v10, %v310_v10  ;;  %1231 = vmatprep.subr.mxu1 %v310_v10  ;;  %v1320_v12 = vpack.c.bf16 %v321_v9, %v320_v8  ;;  %v322_v13 = vld [vmem:[#allocation6 + $0x30] sm:$0xff]  ;;  %v323_v14 = vld [vmem:[#allocation6 + $0x38] sm:$0xff]  ;;  %v324_v16 = vld [vmem:[#allocation6 + $0x40] sm:$0xff]  ;;  %s912_s7 = scalar_lea.sflag [#allocation5], %s1971_s10  ;;  %s1592_s12 = scalar_lea.vmem %s932_s30, 128 }
  0x8e   : > { %1315 = vmatpush3.bf16.msra.mxu0 %v1314_v5  ;;  %1232 = vmatpush3.msra.mxu1 %v310_v10  ;;  %v1323_v15 = vpack.c.bf16 %v323_v14, %v322_v13  ;;  %v325_v17 = vld [vmem:[#allocation6 + $0x48] sm:$0xff]  ;;  %v326_v19 = vld [vmem:[#allocation6 + $0x50] sm:$0xff]  ;;  %v327_v20 = vld [vmem:[#allocation6 + $0x58] sm:$0xff]  ;;  %p1593_p13 = scmp.ne.s32.totalorder %s932_s30, %s1592_s12  ;;  %s1725_s11 = smov [#allocation11]  }
  0x8f   : > { %1316 = vmatprep.subr.bf16.mxu0 %v1722_v0  ;;  %314 = vadd.xlane.f32.xlu0 %v313_v11  ;;  %v1326_v18 = vpack.c.bf16 %v325_v17, %v324_v16  ;;  %v1329_v21 = vpack.c.bf16 %v327_v20, %v326_v19  ;;  %v328_v22 = vld [vmem:[#allocation6 + $0x60] sm:$0xff]  ;;  %v329_v23 = vld [vmem:[#allocation6 + $0x68] sm:$0xff]  ;;  %v330_v25 = vld [vmem:[#allocation6 + $0x70] sm:$0xff]  ;;  %s1596_s14 = sshll.u32 %s1725_s11, 4  ;;  %s1597_s14 = int_to_ptr.vmem [resolvable:$false] %s1596_s14 }
  0x90   : > { %v1332_v24 = vpack.c.bf16 %v329_v23, %v328_v22  ;;  %v331_v26 = vld [vmem:[#allocation6 + $0x78] sm:$0xff]  ;;  %v1104_v28 = vld [vmem:[#allocation8] ss:$0 sm:$0xff]  ;;  %v1105_v31 = vld [vmem:[#allocation8 + $0x1] ss:$0 sm:$0xff]  ;;  %p1594_p6 = pnand %p1593_p13, %p1916_p10  ;;  %s1598_s16 = scalar_lea.vmem %s1597_s14, 256 }
  0x91   : > { %v1335_v27 = vpack.c.bf16 %v331_v26, %v330_v25  ;;  %v734_v42 = vld [vmem:[#allocation9] sm:$0xff]  ;;  %v735_v43 = vld [vmem:[#allocation9 + $0x8] sm:$0xff]  ;;  %v736_v46 = vld [vmem:[#allocation9 + $0x10] sm:$0xff]  ;;  %p1599_p5 = scmp.lt.s32.totalorder %s932_s30, %s1597_s14  ;;  %p1600_p7 = scmp.lt.s32.totalorder %s1598_s16, %s1592_s12 }
  0x92   : > { %1318 = vmatpush3.bf16.msra.mxu0 %v1317_v7  ;;  %v1337_v44 = vpack.c.bf16 %v735_v43, %v734_v42  ;;  %v737_v47 = vld [vmem:[#allocation9 + $0x18] sm:$0xff]  ;;  %v738_v50 = vld [vmem:[#allocation9 + $0x20] sm:$0xff]  ;;  %v739_v51 = vld [vmem:[#allocation9 + $0x28] sm:$0xff]  ;;  %p1595_p3 = pneg %p1594_p6 }
  0x93   : > { %1319 = vmatprep.subr.bf16.mxu0 %v1722_v0  ;;  %v1341_v48 = vpack.c.bf16 %v737_v47, %v736_v46  ;;  %v1345_v52 = vpack.c.bf16 %v739_v51, %v738_v50  ;;  %v740_v54 = vld [vmem:[#allocation9 + $0x30] sm:$0xff]  ;;  %v741_v55 = vld [vmem:[#allocation9 + $0x38] sm:$0xff]  ;;  %v742_v58 = vld [vmem:[#allocation9 + $0x40] sm:$0xff]  ;;  %p1601_p9 = por %p1600_p7, %p1599_p5 }
  0x94   : > { %1338 = vmatprep.subr.bf16.mxu1 %v1337_v44  ;;  %v1349_v56 = vpack.c.bf16 %v741_v55, %v740_v54  ;;  %v743_v59 = vld [vmem:[#allocation9 + $0x48] sm:$0xff]  ;;  %v744_v62 = vld [vmem:[#allocation9 + $0x50] sm:$0xff]  ;;  %v745_v63 = vld [vmem:[#allocation9 + $0x58] sm:$0xff] }
  0x95   : > { %v1353_v60 = vpack.c.bf16 %v743_v59, %v742_v58  ;;  %v746_v2 = vld [vmem:[#allocation9 + $0x60] sm:$0xff]  ;;  %v747_v3 = vld [vmem:[#allocation9 + $0x68] sm:$0xff]  ;;  %v748_v6 = vld [vmem:[#allocation9 + $0x70] sm:$0xff]  ;;  %p1602_p0 = pnand %p1601_p9, %p1595_p3 }
  0x96   : > { %1321 = vmatpush3.bf16.msra.mxu0 %v1320_v12  ;;  %v1361_v4 = vpack.c.bf16 %v747_v3, %v746_v2  ;;  %v749_v7 = vld [vmem:[#allocation9 + $0x78] sm:$0xff] }
  0x97   : > { %1322 = vmatprep.subr.bf16.mxu0 %v1722_v0  ;;  %v1365_v8 = vpack.c.bf16 %v749_v7, %v748_v6 }
  0x9a   : > { %1324 = vmatpush3.bf16.msra.mxu0 %v1323_v15 }
  0x9b   : > { %1325 = vmatprep.subr.bf16.mxu0 %v1722_v0 }
  0x9e   : > { %1327 = vmatpush3.bf16.msra.mxu0 %v1326_v18 }
  0x9f   : > { %1328 = vmatprep.subr.bf16.mxu0 %v1722_v0 }
  0xa2   : > { %1330 = vmatpush3.bf16.msra.mxu0 %v1329_v21 }
  0xa3   : > { %1331 = vmatprep.subr.bf16.mxu0 %v1722_v0 }
  0xa6   : > { %1333 = vmatpush3.bf16.msra.mxu0 %v1332_v24 }
  0xa7   : > { %1334 = vmatprep.subr.bf16.mxu0 %v1722_v0  ;;  %v1357_v0 = vpack.c.bf16 %v745_v63, %v744_v62 }
  0xaa   : > { %1336 = vmatpush3.bf16.msra.mxu0 %v1335_v27 }
  0xad   : > { %1229 = vmatmul.mubr.f32.vlgmr.msra.gmra.mrb[0].mxu0 %v310_v10 }
 0x11c   : > { %v315_v29 = vpop.xlane.xlu0 %314 }
 0x11d   : > { %v406_v30 = vmul.f32 %v1104_v28, %v315_v29 }
 0x180   : > { %v398_v32 = vpop.f32.mrb[0].mxu0 }
 0x181   : > { %v407_v33 = vadd.f32 %v406_v30, %v398_v32  ;;  %v1230_v34 = vpop.f32.mrb[1].mxu0 }
 0x183   : > { %v412_v35 = vadd.f32 %v1105_v31, %v407_v33 }
 0x185   : > { %v413_v36 = vmul.f32 1.442695, %v412_v35 }
 0x187   : > { %1474 = vpow2.f32 %v413_v36 }
 0x191   : > { %v1475_v37 = vpop.eup %1474 }
 0x192   : > { %415 = vadd.xlane.f32.xlu0 %v1475_v37 }
 0x21f   : > { %v416_v38 = vpop.xlane.xlu0 %415 }
 0x220   : > { %v417_v39 = vadd.f32 1e-08, %v416_v38 }
 0x222   : > { %1476 = vrcp.f32 %v417_v39 }
 0x22c   : > { %v1477_v40 = vpop.eup %1476 }
 0x22d   : > { %v419_v41 = vmul.f32 %v1477_v40, %v1475_v37 }
 0x22f   : > { %457 = vxpose.xlu1.b32.start.end [1/1] (short) %v419_v41, 128  ;;  %420 = vst [vmem:[%s1991_s26] sm:$0xff] %v419_v41 }
 0x2af   : > { %v473_v45 = vpop.trf.xlu1 }
 0x2b0   : > { %1233 = vmatprep.mubr.msk.f32.mxu1 %vm489_vm1, %v473_v45 }
 0x2b3   : > { %v474_v49 = vpop.trf.xlu1 }
 0x2b4   : > { %1234 = vmatmul.mubr.msk.f32.vlgmr.msra.gmra.mrb[0].mxu1 %vm489_vm1, %v474_v49 }
 0x2b5   : > { %1340 = vmatpush3.bf16.msra.mxu1 %v1337_v44 }
 0x2b6   : > { %1342 = vmatprep.subr.bf16.mxu1 %v1341_v48 }
 0x2b7   : > { %v475_v53 = vpop.trf.xlu1 }
 0x2b8   : > { %1236 = vmatprep.mubr.msk.f32.mxu1 %vm489_vm1, %v475_v53 }
 0x2b9   : > { %1344 = vmatpush3.bf16.msra.mxu1 %v1341_v48 }
 0x2ba   : > { %1346 = vmatprep.subr.bf16.mxu1 %v1345_v52 }
 0x2bb   : > { %v476_v57 = vpop.trf.xlu1 }
 0x2bc   : > { %1237 = vmatmul.mubr.msk.f32.gmra.mrb[2].mxu1 %vm489_vm1, %v476_v57 }
 0x2bd   : > { %1348 = vmatpush3.bf16.msra.mxu1 %v1345_v52 }
 0x2be   : > { %1350 = vmatprep.subr.bf16.mxu1 %v1349_v56 }
 0x2bf   : > { %v477_v61 = vpop.trf.xlu1 }
 0x2c0   : > { %1239 = vmatprep.mubr.msk.f32.mxu1 %vm489_vm1, %v477_v61 }
 0x2c1   : > { %1352 = vmatpush3.bf16.msra.mxu1 %v1349_v56 }
 0x2c2   : > { %1354 = vmatprep.subr.bf16.mxu1 %v1353_v60 }
 0x2c3   : > { %v478_v1 = vpop.trf.xlu1 }
 0x2c4   : > { %1240 = vmatmul.mubr.msk.f32.gmra.mrb[4].mxu1 %vm489_vm1, %v478_v1 }
 0x2c5   : > { %1356 = vmatpush3.bf16.msra.mxu1 %v1353_v60 }
 0x2c6   : > { %1358 = vmatprep.subr.bf16.mxu1 %v1357_v0 }
 0x2c7   : > { %v479_v5 = vpop.trf.xlu1 }
 0x2c8   : > { %1242 = vmatprep.mubr.msk.f32.mxu1 %vm489_vm1, %v479_v5 }
 0x2c9   : > { %1360 = vmatpush3.bf16.msra.mxu1 %v1357_v0 }
 0x2ca   : > { %1362 = vmatprep.subr.bf16.mxu1 %v1361_v4 }
 0x2cb   : > { %v480_v9 = vpop.trf.xlu1 }
 0x2cc   : > { %1243 = vmatmul.mubr.msk.f32.gmra.mrb[6].mxu1 %vm489_vm1, %v480_v9 }
 0x2cd   : > { %1364 = vmatpush3.bf16.msra.mxu1 %v1361_v4 }
 0x2ce   : > { %1366 = vmatprep.subr.bf16.mxu1 %v1365_v8 }
 0x2cf   : > { %v481_v10 = vpop.trf.xlu1 }
 0x2d0   : > { %1245 = vmatprep.mubr.msk.f32.mxu1 %vm489_vm1, %v481_v10 }
 0x2d1   : > { %1368 = vmatpush3.bf16.msra.mxu1 %v1365_v8 }
 0x2d3   : > { %v482_v11 = vpop.trf.xlu1 }
 0x2d4   : > { %1246 = vmatmul.mubr.msk.f32.gmra.mrb[8].mxu1 %vm489_vm1, %v482_v11 }
 0x2d7   : > { %v483_v12 = vpop.trf.xlu1 }
 0x2d8   : > { %1248 = vmatprep.mubr.msk.f32.mxu1 %vm489_vm1, %v483_v12 }
 0x2db   : > { %v484_v13 = vpop.trf.xlu1 }
 0x2dc   : > { %1249 = vmatmul.mubr.msk.f32.gmra.mrb[10].mxu1 %vm489_vm1, %v484_v13 }
 0x2df   : > { %v485_v14 = vpop.trf.xlu1 }
 0x2e0   : > { %1251 = vmatprep.mubr.msk.f32.mxu1 %vm489_vm1, %v485_v14 }
 0x2e3   : > { %v486_v15 = vpop.trf.xlu1 }
 0x2e4   : > { %1252 = vmatmul.mubr.msk.f32.gmra.mrb[12].mxu1 %vm489_vm1, %v486_v15 }
 0x2e7   : > { %v487_v16 = vpop.trf.xlu1 }
 0x2e8   : > { %1254 = vmatprep.mubr.msk.f32.mxu1 %vm489_vm1, %v487_v16 }
 0x2eb   : > { %v488_v17 = vpop.trf.xlu1 }
 0x2ec   : > { %1255 = vmatmul.mubr.msk.f32.gmra.mrb[14].mxu1 %vm489_vm1, %v488_v17 }
 0x387   : > { %v1235_v18 = vpop.f32.mrb[0].mxu1 }
 0x388   : > { %v604_v19 = vpop.f32.mrb[1].mxu1 }
 0x389   : > { %1289 = vmatprep.mubr.f32.mxu1 %v604_v19 }
 0x38a   : > { %1290 = vmatmul.mubr.f32.vlgmr.msra.gmra.mrb[16].mxu1 %v1235_v18 }
 0x38f   : > { %v1238_v20 = vpop.f32.mrb[2].mxu1 }
 0x390   : > { %v614_v21 = vpop.f32.mrb[3].mxu1 }
 0x391   : > { %1292 = vmatprep.mubr.f32.mxu1 %v614_v21 }
 0x392   : > { %1293 = vmatmul.mubr.f32.gmra.mrb[18].mxu1 %v1238_v20 }
 0x397   : > { %v1241_v22 = vpop.f32.mrb[4].mxu1 }
 0x398   : > { %v624_v23 = vpop.f32.mrb[5].mxu1 }
 0x399   : > { %1295 = vmatprep.mubr.f32.mxu1 %v624_v23 }
 0x39a   : > { %1296 = vmatmul.mubr.f32.gmra.mrb[20].mxu1 %v1241_v22 }
 0x39f   : > { %v1244_v24 = vpop.f32.mrb[6].mxu1 }
 0x3a0   : > { %v634_v25 = vpop.f32.mrb[7].mxu1 }
 0x3a1   : > { %1298 = vmatprep.mubr.f32.mxu1 %v634_v25 }
 0x3a2   : > { %1299 = vmatmul.mubr.f32.gmra.mrb[22].mxu1 %v1244_v24 }
 0x3a7   : > { %v1247_v26 = vpop.f32.mrb[8].mxu1 }
 0x3a8   : > { %v644_v27 = vpop.f32.mrb[9].mxu1 }
 0x3a9   : > { %1301 = vmatprep.mubr.f32.mxu1 %v644_v27 }
 0x3aa   : > { %1302 = vmatmul.mubr.f32.gmra.mrb[24].mxu1 %v1247_v26 }
 0x3af   : > { %v1250_v28 = vpop.f32.mrb[10].mxu1 }
 0x3b0   : > { %v654_v29 = vpop.f32.mrb[11].mxu1 }
 0x3b1   : > { %1304 = vmatprep.mubr.f32.mxu1 %v654_v29 }
 0x3b2   : > { %1305 = vmatmul.mubr.f32.gmra.mrb[26].mxu1 %v1250_v28 }
 0x3b7   : > { %v1253_v30 = vpop.f32.mrb[12].mxu1 }
 0x3b8   : > { %v664_v31 = vpop.f32.mrb[13].mxu1 }
 0x3b9   : > { %1307 = vmatprep.mubr.f32.mxu1 %v664_v31 }
 0x3ba   : > { %1308 = vmatmul.mubr.f32.gmra.mrb[28].mxu1 %v1253_v30 }
 0x3bf   : > { %v1256_v32 = vpop.f32.mrb[14].mxu1 }
 0x3c0   : > { %v674_v33 = vpop.f32.mrb[15].mxu1 }
 0x3c1   : > { %1310 = vmatprep.mubr.f32.mxu1 %v674_v33 }
 0x3c2   : > { %1311 = vmatmul.mubr.f32.gmra.mrb[30].mxu1 %v1256_v32 }
 0x3c3   : > { %1605 = shalt.err (!%p1602_p0)
}
 0x3c4   : > { %s1606_s17 = scalar_lea.hbm %s2015_s9, 128  ;;  %s1610_s24 = scalar_lea.hbm %s2114_s4, 256 }
 0x3c5   : > { %p1607_p4 = scmp.ne.s32.totalorder %s2015_s9, %s1606_s17  ;;  %p1611_p1 = scmp.lt.u32.totalorder %s2015_s9, %s2114_s4 }
 0x3c6   : > { %p1612_p12 = scmp.lt.u32.totalorder %s1610_s24, %s1606_s17  ;;  %p1614_p13 = scmp.lt.u32.totalorder %s1606_s17, %s2015_s9 }
 0x3c7   : > { %p1608_p2 = pnand %p1607_p4, %p1916_p10 }
 0x3c8   : > { %p1613_p11 = por %p1612_p12, %p1611_p1 }
 0x3c9   : > { %p1609_p8 = pneg %p1608_p2 }
 0x3ca   : > { %p1615_p6 = por %p1614_p13, %p1613_p11 }
 0x3cc   : > { %p1616_p3 = pnand %p1615_p6, %p1609_p8 }
 0x3ce   : > { %1619 = shalt.err (!%p1616_p3)
}
 0x3cf   : > { %1383 = dma.vmem_to_hbm [thread:$0]  (%p1916_p10), %s932_s30, 128, %s2015_s9, %s912_s7  }
 0x3d0   : > { %s1103_s28 = sshll.u32 %s1971_s10, 7  ;;  %s1129_s30 = sshll.u32 %s1706_s21, 11 }
 0x3d1   : > { %s2036_s27 = scalar_lea.vmem [#allocation12], %s1103_s28  ;;  %s2057_s12 = scalar_lea.hbm %s2115_s5, %s1129_s30 }
 0x3d2   : > { %s944_s6 = sshll.u32 %s2036_s27, 4  ;;  %s917_s11 = scalar_lea.sflag [#allocation13], %s1971_s10  ;;  %s2059_s6 = int_to_ptr.vmem [resolvable:$true] %s944_s6 }
 0x3d3   : > { %s1620_s14 = scalar_lea.vmem %s2059_s6, 2048  ;;  %s1726_s21 = smov [#allocation12]  }
 0x3d4   : > { %p1621_p5 = scmp.ne.s32.totalorder %s2059_s6, %s1620_s14  ;;  %s1624_s16 = sshll.u32 %s1726_s21, 4  ;;  %s1625_s16 = int_to_ptr.vmem [resolvable:$false] %s1624_s16 }
 0x3d5   : > { %s1626_s17 = scalar_lea.vmem %s1625_s16, 4096  ;;  %p1627_p0 = scmp.lt.s32.totalorder %s2059_s6, %s1625_s16 }
 0x3d6   : > { %p1622_p7 = pnand %p1621_p5, %p1916_p10  ;;  %p1628_p4 = scmp.lt.s32.totalorder %s1626_s17, %s1620_s14 }
 0x3d8   : > { %p1623_p9 = pneg %p1622_p7  ;;  %p1629_p2 = por %p1628_p4, %p1627_p0 }
 0x3da   : > { %p1630_p8 = pnand %p1629_p2, %p1623_p9 }
 0x45d   : > { %v1291_v34 = vpop.f32.mrb[16].mxu1 }
 0x45e   : > { %896 = vst [vmem:[%s2036_s27 + $0x8] sm:$0xff] %v1291_v34  ;;  %v816_v35 = vpop.f32.mrb[17].mxu1 }
 0x45f   : > { %895 = vst [vmem:[%s2036_s27] sm:$0xff] %v816_v35 }
 0x465   : > { %v1294_v36 = vpop.f32.mrb[18].mxu1 }
 0x466   : > { %898 = vst [vmem:[%s2036_s27 + $0x18] sm:$0xff] %v1294_v36  ;;  %v826_v37 = vpop.f32.mrb[19].mxu1 }
 0x467   : > { %897 = vst [vmem:[%s2036_s27 + $0x10] sm:$0xff] %v826_v37 }
 0x46d   : > { %v1297_v38 = vpop.f32.mrb[20].mxu1 }
 0x46e   : > { %900 = vst [vmem:[%s2036_s27 + $0x28] sm:$0xff] %v1297_v38  ;;  %v836_v39 = vpop.f32.mrb[21].mxu1 }
 0x46f   : > { %899 = vst [vmem:[%s2036_s27 + $0x20] sm:$0xff] %v836_v39 }
 0x475   : > { %v1300_v40 = vpop.f32.mrb[22].mxu1 }
 0x476   : > { %902 = vst [vmem:[%s2036_s27 + $0x38] sm:$0xff] %v1300_v40  ;;  %v846_v41 = vpop.f32.mrb[23].mxu1 }
 0x477   : > { %901 = vst [vmem:[%s2036_s27 + $0x30] sm:$0xff] %v846_v41 }
 0x47d   : > { %v1303_v42 = vpop.f32.mrb[24].mxu1 }
 0x47e   : > { %904 = vst [vmem:[%s2036_s27 + $0x48] sm:$0xff] %v1303_v42  ;;  %v856_v43 = vpop.f32.mrb[25].mxu1 }
 0x47f   : > { %903 = vst [vmem:[%s2036_s27 + $0x40] sm:$0xff] %v856_v43 }
 0x485   : > { %v1306_v44 = vpop.f32.mrb[26].mxu1 }
 0x486   : > { %906 = vst [vmem:[%s2036_s27 + $0x58] sm:$0xff] %v1306_v44  ;;  %v866_v45 = vpop.f32.mrb[27].mxu1 }
 0x487   : > { %905 = vst [vmem:[%s2036_s27 + $0x50] sm:$0xff] %v866_v45 }
 0x48d   : > { %v1309_v46 = vpop.f32.mrb[28].mxu1 }
 0x48e   : > { %908 = vst [vmem:[%s2036_s27 + $0x68] sm:$0xff] %v1309_v46  ;;  %v876_v47 = vpop.f32.mrb[29].mxu1 }
 0x48f   : > { %907 = vst [vmem:[%s2036_s27 + $0x60] sm:$0xff] %v876_v47 }
 0x495   : > { %v1312_v48 = vpop.f32.mrb[30].mxu1 }
 0x496   : > { %910 = vst [vmem:[%s2036_s27 + $0x78] sm:$0xff] %v1312_v48  ;;  %v886_v49 = vpop.f32.mrb[31].mxu1 }
 0x497   : > { %909 = vst [vmem:[%s2036_s27 + $0x70] sm:$0xff] %v886_v49 }
 0x498   : > { %1633 = shalt.err (!%p1630_p8)
}
 0x499   : > { %s1634_s25 = scalar_lea.hbm %s2057_s12, 2048  ;;  %s1638_s15 = scalar_lea.hbm %s2115_s5, 4096 }
 0x49a   : > { %p1635_p1 = scmp.ne.s32.totalorder %s2057_s12, %s1634_s25  ;;  %p1639_p13 = scmp.lt.u32.totalorder %s2057_s12, %s2115_s5 }
 0x49b   : > { %p1640_p6 = scmp.lt.u32.totalorder %s1638_s15, %s1634_s25  ;;  %p1642_p5 = scmp.lt.u32.totalorder %s1634_s25, %s2057_s12 }
 0x49c   : > { %p1636_p12 = pnand %p1635_p1, %p1916_p10 }
 0x49d   : > { %p1641_p3 = por %p1640_p6, %p1639_p13 }
 0x49e   : > { %p1637_p11 = pneg %p1636_p12 }
 0x49f   : > { %p1643_p7 = por %p1642_p5, %p1641_p3 }
 0x4a1   : > { %p1644_p9 = pnand %p1643_p7, %p1637_p11 }
 0x4a3   : > { %1647 = shalt.err (!%p1644_p9)
}
 0x4a4   : > { %s1727_s27 = smov 128   ;;  %s1728_s30 = smov 8  }
 0x4a5   : > { %1384 = dma.vmem_to_hbm [thread:$0]  (%p1916_p10), %s2059_s6, 2048, %s2057_s12, %s917_s11, %s1727_s27, %s1727_s27, %s1728_s30  }
 0x4a6 PF: > { %s2137_s9 = sld [smem:[#allocation19_spill]]  ;;  %s2138_s7 = sld [smem:[#allocation20_spill]] }
 0x4a7   : > { %p2140_p4 = scmp.ge.s32.totalorder %s1714_s23, 2 }
 0x4ac   : > { %s959_s14 = sand.u32 1, %s2137_s9   ;;  %p2139_p0 = scmp.ne.s32.totalorder %s2138_s7, 0 }
 0x4ad   : > { %s960_s21 = scalar_lea.sflag [#allocation5], %s959_s14 }
 0x4ae   : > { %p1402_p2 = pnand %p2140_p4, %p2139_p0 }
 0x4b0   : > { %1685 = dma.done.wait (!%p1402_p2), %s960_s21, 128  }
 0x4b1   : > { %1687 = vsyncadd (!%p1402_p2), %s960_s21, 4294967168  ;;  %s969_s16 = scalar_lea.sflag [#allocation13], %s959_s14 }
 0x4b2   : > { %1689 = dma.done.wait (!%p1402_p2), %s969_s16, 2048  }
 0x4b3   : > { %1691 = vsyncadd (!%p1402_p2), %s969_s16, 4294965248  ;;  %s27_s23 = sadd.s32 1, %s1714_s23   ;;  %s2141_s18 = smov %s1698_s19 }
 0x4b4   : > { %p24_p8 = scmp.ge.s32.totalorder %s27_s23, 4   ;;  %s2142_s19 = smov %s1702_s20 }
 0x4b5   : > { %s2143_s20 = smov %s1928_s13  ;;  %s2144_s21 = smov %s1710_s22 }
 0x4b6   : > { %s2145_s22 = smov %s2147_s8  ;;  %26 = sbr.rel (!%p24_p8) target bundleno = 10 (0xa), region = 118 }
 0x4bd   :  { %974 = vsyncpa [#allocation4], 1 }
 0x4be   :  { %976 = vsyncpa [#allocation4 + $0x1], 1 }
 0x4bf   :  { %977 = vsyncpa [#allocation7], 1 }
 0x4c0   :  { %978 = vsyncpa [#allocation10], 1 }
 0x4c1   :  { %979 = vsyncpa [#allocation5], 1 }
 0x4c2   :  { %981 = vsyncpa [#allocation5 + $0x1], 1 }
 0x4c3   :  { %982 = vsyncpa [#allocation13], 1 }
 0x4c4   :  { %984 = vsyncpa [#allocation13 + $0x1], 1 }

// kernel: _splat_attention_impl.3
= control target key start
LH: loop header
LB: loop body
LE: loop exit
PB: predicated region body
PF: predicated region fallthrough
CT: control target
= control target key end

     0   :  { %7 = vsyncpa [#allocation3], 0  ;;  %s1007_s0 = inlined_call_operand.hbm [shape: f32[2,8,128], index: 0, kind: input, shape index: {}]   ;;  %s1008_s1 = inlined_call_operand.hbm [shape: f32[2,128,128], index: 1, kind: input, shape index: {}]   ;;  %s1009_s2 = inlined_call_operand.hbm [shape: f32[2,8,128], index: 2, kind: output, shape index: {}]  }
   0x1   :  { %9 = vsyncpa [#allocation3 + $0x1], 0 }
   0x2   :  { %10 = vsyncpa [#allocation6], 0 }
   0x3   :  { %12 = vsyncpa [#allocation6 + $0x1], 0 }
   0x4   :  { %13 = vsyncpa [#allocation4], 0 }
   0x5   :  { %15 = vsyncpa [#allocation4 + $0x1], 0  ;;  %s759_s9 = smov 0   ;;  %s761_s10 = smov 0  }
   0x6   :  { %s763_s11 = smov 0   ;;  %s765_s12 = smov 0  }
   0x7   :  { %s767_s13 = smov 0   ;;  %s769_s14 = smov 0  }
   0x8 LB: > { %s422_s15 = sadd.s32 4294967295, %s734_s14   ;;  %s423_s16 = sadd.s32 4294967294, %s734_s14   ;;  %s734_s14 = sphi %s769_s14, %s21_s14   ;;  %s730_s13 = sphi %s767_s13, %s1028_s13   ;;  %s726_s12 = sphi %s765_s12, %s1027_s12   ;;  %s722_s11 = sphi %s763_s11, %s1026_s11   ;;  %s718_s10 = sphi %s761_s10, %s1025_s10   ;;  %s714_s9 = sphi %s759_s9, %s1024_s9  }
   0x9   : > { %s33_s17 = sadd.s32 1, %s730_s13  ;;  %s42_s18 = sadd.s32 1, %s722_s11 }
   0xa   : > { %p35_p0 = scmp.ge.s32.totalorder %s33_s17, 2  ;;  %p49_p1 = scmp.ne.s32.totalorder %s722_s11, %s718_s10 }
   0xb   : > { %p50_p2 = scmp.eq.s32.totalorder %s734_s14, 0  ;;  %p55_p3 = scmp.ne.s32.totalorder %s718_s10, %s714_s9 }
   0xc   : > { %s1030_s17 = smov (%p35_p0, %s33_s17), 0  ;;  %p56_p5 = scmp.eq.s32.totalorder %s422_s15, 0 }
   0xd   : > { %p800_p4 = por %p50_p2, %p49_p1  ;;  %s37_s20 = ssub.s32 %s730_s13, %s1030_s17 }
   0xe   : > { %p107_p6 = scmp.eq.s32.totalorder %s422_s15, 1  ;;  %p40_p7 = scmp.eq.s32.totalorder %s37_s20, 0 }
   0xf   : > { %p806_p8 = por %p56_p5, %p55_p3  ;;  %p113_p10 = scmp.eq.s32.totalorder %s423_s16, 1 }
  0x10   : > { %p810_p9 = por %p107_p6, %p49_p1  ;;  %p533_p13 = scmp.lt.s32.totalorder %s734_s14, 2 }
  0x11   : > { %s1013_s21 = scalar_select %p806_p8, 1, 0 }
  0x12   : > { %s1014_s22 = scalar_select %p810_p9, 1, 0 }
  0x13   : > { %s815_s23 = scalar_select %p40_p7, %s722_s11, %s42_s18  }
  0x14   : > { %p817_p11 = por %p113_p10, %p55_p3  ;;  %s824_s25 = sand.u32 1, %s722_s11  }
  0x15   : > { %s426_s26 = sshll.u32 %s824_s25, 3  ;;  %s427_s27 = sshll.u32 %s730_s13, 7 }
  0x16   : > { %s1015_s24 = scalar_select %p817_p11, 1, 0 }
  0x17   : > { %s831_s30 = scalar_lea.hbm %s1007_s0, %s427_s27  ;;  %s137_s3 = scalar_lea.vmem [#allocation2], %s426_s26 }
  0x18   : > { %s145_s4 = sshll.u32 %s137_s3, 4  ;;  %p837_p0 = pnand %p533_p13, %p800_p4  ;;  %s833_s4 = int_to_ptr.vmem [resolvable:$true] %s145_s4 }
  0x19   : > { %s134_s6 = scalar_lea.sflag [#allocation3], %s824_s25  ;;  %s588_s7 = scalar_lea.hbm %s831_s30, 128 }
  0x1a   : > { %p589_p3 = scmp.ne.s32.totalorder %s831_s30, %s588_s7  ;;  %p590_p5 = pneg %p837_p0 }
  0x1b   : > { %s593_s16 = scalar_lea.hbm %s1007_s0, 256  ;;  %p594_p4 = scmp.lt.u32.totalorder %s831_s30, %s1007_s0 }
  0x1c   : > { %p591_p6 = pnand %p590_p5, %p589_p3  ;;  %p595_p10 = scmp.lt.u32.totalorder %s593_s16, %s588_s7 }
  0x1d   : > { %p597_p12 = scmp.lt.u32.totalorder %s588_s7, %s831_s30 }
  0x1e   : > { %p592_p7 = pneg %p591_p6  ;;  %p596_p13 = por %p595_p10, %p594_p4 }
  0x20   : > { %p598_p1 = por %p597_p12, %p596_p13 }
  0x22   : > { %p599_p2 = pnand %p598_p1, %p592_p7 }
  0x24   : > { %602 = shalt.err (!%p599_p2)
}
  0x25   : > { %s603_s20 = scalar_lea.vmem %s833_s4, 128  ;;  %s736_s26 = smov [#allocation2]  }
  0x26   : > { %p604_p3 = scmp.ne.s32.totalorder %s833_s4, %s603_s20  ;;  %s608_s27 = sshll.u32 %s736_s26, 4  ;;  %s609_s27 = int_to_ptr.vmem [resolvable:$false] %s608_s27 }
  0x27   : > { %s610_s28 = scalar_lea.vmem %s609_s27, 256  ;;  %p611_p9 = scmp.lt.s32.totalorder %s833_s4, %s609_s27 }
  0x28   : > { %p606_p6 = pnand %p604_p3, %p590_p5  ;;  %p612_p4 = scmp.lt.s32.totalorder %s610_s28, %s603_s20 }
  0x2a   : > { %p607_p11 = pneg %p606_p6  ;;  %p613_p10 = por %p612_p4, %p611_p9 }
  0x2c   : > { %p614_p12 = pnand %p613_p10, %p607_p11 }
  0x2e   : > { %617 = shalt.err (!%p614_p12)
}
  0x2f   : > { %525 = dma.hbm_to_vmem [thread:$0]  (!%p837_p0), %s831_s30, 128, %s833_s4, %s134_s6  }
  0x30   : > { %p1017_p1 = scmp.lt.s32.totalorder %s734_s14, 3  ;;  %p1018_p2 = scmp.ge.s32.totalorder %s734_s14, 1 }
  0x31   : > { %s428_s3 = sshll.u32 %s824_s25, 7  ;;  %s439_s7 = sshll.u32 %s730_s13, 11 }
  0x32   : > { %p873_p7 = pnand %p1018_p2, %p1017_p1  ;;  %s882_s16 = scalar_lea.hbm %s1008_s1, %s439_s7 }
  0x33   : > { %s156_s18 = scalar_lea.vmem [#allocation5], %s428_s3  ;;  %s153_s30 = scalar_lea.sflag [#allocation6], %s824_s25 }
  0x34   : > { %s163_s19 = sshll.u32 %s156_s18, 4  ;;  %s618_s4 = scalar_lea.hbm %s882_s16, 2048  ;;  %s884_s19 = int_to_ptr.vmem [resolvable:$true] %s163_s19 }
  0x35   : > { %p619_p9 = scmp.ne.s32.totalorder %s882_s16, %s618_s4  ;;  %s623_s26 = scalar_lea.hbm %s1008_s1, 4096 }
  0x36   : > { %p624_p3 = scmp.lt.u32.totalorder %s882_s16, %s1008_s1  ;;  %p625_p6 = scmp.lt.u32.totalorder %s623_s26, %s618_s4 }
  0x37   : > { %p621_p11 = pnand %p619_p9, %p590_p5  ;;  %p627_p10 = scmp.lt.u32.totalorder %s618_s4, %s882_s16 }
  0x38   : > { %p626_p4 = por %p625_p6, %p624_p3 }
  0x39   : > { %p622_p13 = pneg %p621_p11 }
  0x3a   : > { %p628_p12 = por %p627_p10, %p626_p4 }
  0x3c   : > { %p629_p1 = pnand %p628_p12, %p622_p13 }
  0x3e   : > { %632 = shalt.err (!%p629_p1)
}
  0x3f   : > { %s633_s3 = scalar_lea.vmem %s884_s19, 2048  ;;  %s737_s7 = smov [#allocation5]  }
  0x40   : > { %p634_p2 = scmp.ne.s32.totalorder %s884_s19, %s633_s3  ;;  %s638_s8 = sshll.u32 %s737_s7, 4  ;;  %s639_s8 = int_to_ptr.vmem [resolvable:$false] %s638_s8 }
  0x41   : > { %s640_s15 = scalar_lea.vmem %s639_s8, 4096  ;;  %p641_p8 = scmp.lt.s32.totalorder %s884_s19, %s639_s8 }
  0x42   : > { %p636_p9 = pnand %p634_p2, %p590_p5  ;;  %p642_p3 = scmp.lt.s32.totalorder %s640_s15, %s633_s3 }
  0x44   : > { %p637_p11 = pneg %p636_p9  ;;  %p643_p6 = por %p642_p3, %p641_p8 }
  0x46   : > { %p644_p4 = pnand %p643_p6, %p637_p11 }
  0x48   : > { %647 = shalt.err (!%p644_p4)
}
  0x49   : > { %s738_s18 = smov 128   ;;  %s739_s4 = smov 8  }
  0x4a   : > { %528 = dma.hbm_to_vmem [thread:$0]  (!%p837_p0), %s882_s16, 2048, %s884_s19, %s153_s30, %s738_s18, %s738_s18, %s739_s4  }
  0x4b   : > { %175 = sbr.rel (%p873_p7) target bundleno = 346 (0x15a), region = 28  ;;  %s915_s6 = sand.u32 (!%p873_p7), 1, %s718_s10  }
  0x4c   : > { %s432_s20 = sshll.u32 (!%p873_p7), %s915_s6, 3  ;;  %s178_s26 = scalar_lea.sflag (!%p873_p7), [#allocation3], %s915_s6 }
  0x4d   : > { %s921_s27 = scalar_lea.vmem (!%p873_p7), [#allocation2], %s432_s20  ;;  %p1020_p8 = scmp.ne.s32.totalorder (!%p873_p7), %s1013_s21, 0 }
  0x52   : > { %701 = dma.done.wait (%p1020_p8), %s178_s26, 128  }
  0x53   : > { %703 = vsyncadd (%p1020_p8), %s178_s26, 4294967168  ;;  %s433_s25 = sshll.u32 %s915_s6, 7  ;;  %s187_s5 = scalar_lea.sflag [#allocation6], %s915_s6 }
  0x54   : > { %s929_s29 = scalar_lea.vmem [#allocation5], %s433_s25 }
  0x55   : > { %705 = dma.done.wait (%p1020_p8), %s187_s5, 2048  }
  0x56   : > { %707 = vsyncadd (%p1020_p8), %s187_s5, 4294965248  ;;  %v740_v0 = vmov 0.0|0.0   ;;  %vm741_vm0 = vmmov 0   ;;  %v742_v1 = vmov 0.0   ;;  %v217_v2 = vld [vmem:[%s929_s29] sm:$0xff]  ;;  %v218_v3 = vld [vmem:[%s929_s29 + $0x8] sm:$0xff] }
  0x57   : > { %492 = vmatprep.subr.bf16.mxu0 %v740_v0  ;;  %489 = vmatprep.mubr.msk.f32.mxu0 %vm741_vm0, %v742_v1  ;;  %v219_v4 = vld [vmem:[%s929_s29 + $0x10] sm:$0xff]  ;;  %v493_v5 = vpack.c.bf16 %v218_v3, %v217_v2  ;;  %v220_v6 = vld [vmem:[%s929_s29 + $0x18] sm:$0xff]  ;;  %v221_v8 = vld [vmem:[%s929_s29 + $0x20] sm:$0xff]  ;;  %s215_s21 = scalar_lea.vmem [#allocation7], %s432_s20  ;;  %s436_s19 = sshll.u32 %s726_s12, 7 }
  0x58   : > { %v496_v7 = vpack.c.bf16 %v220_v6, %v219_v4  ;;  %v222_v9 = vld [vmem:[%s929_s29 + $0x28] sm:$0xff]  ;;  %v223_v11 = vld [vmem:[%s929_s29 + $0x30] sm:$0xff]  ;;  %v224_v12 = vld [vmem:[%s929_s29 + $0x38] sm:$0xff]  ;;  %s319_s16 = sshll.u32 %s215_s21, 4  ;;  %s960_s3 = scalar_lea.hbm %s1009_s2, %s436_s19  ;;  %s955_s16 = int_to_ptr.vmem [resolvable:$true] %s319_s16 }
  0x59   : > { %494 = vmatpush3.bf16.msra.mxu0 %v493_v5  ;;  %v499_v10 = vpack.c.bf16 %v222_v9, %v221_v8  ;;  %v502_v13 = vpack.c.bf16 %v224_v12, %v223_v11  ;;  %v225_v14 = vld [vmem:[%s929_s29 + $0x40] sm:$0xff]  ;;  %v226_v15 = vld [vmem:[%s929_s29 + $0x48] sm:$0xff]  ;;  %v227_v17 = vld [vmem:[%s929_s29 + $0x50] sm:$0xff]  ;;  %s305_s7 = scalar_lea.sflag [#allocation4], %s915_s6  ;;  %s648_s8 = scalar_lea.vmem %s955_s16, 128 }
  0x5a   : > { %495 = vmatprep.subr.bf16.mxu0 %v740_v0  ;;  %v505_v16 = vpack.c.bf16 %v226_v15, %v225_v14  ;;  %v228_v18 = vld [vmem:[%s929_s29 + $0x58] sm:$0xff]  ;;  %v229_v20 = vld [vmem:[%s929_s29 + $0x60] sm:$0xff]  ;;  %v230_v21 = vld [vmem:[%s929_s29 + $0x68] sm:$0xff]  ;;  %p649_p0 = scmp.ne.s32.totalorder %s955_s16, %s648_s8  ;;  %p1021_p5 = scmp.ne.s32.totalorder %s1014_s22, 0 }
  0x5b   : > { %v508_v19 = vpack.c.bf16 %v228_v18, %v227_v17  ;;  %v511_v22 = vpack.c.bf16 %v230_v21, %v229_v20  ;;  %v231_v23 = vld [vmem:[%s929_s29 + $0x70] sm:$0xff]  ;;  %v232_v24 = vld [vmem:[%s929_s29 + $0x78] sm:$0xff]  ;;  %s743_s12 = smov [#allocation7]  }
  0x5c   : > { %v514_v25 = vpack.c.bf16 %v232_v24, %v231_v23  ;;  %v216_v26 = vld [vmem:[%s921_s27] sm:$0xff]  ;;  %p650_p7 = pnand %p649_p0, %p1021_p5  ;;  %s652_s15 = sshll.u32 %s743_s12, 4  ;;  %s653_s15 = int_to_ptr.vmem [resolvable:$false] %s652_s15 }
  0x5d   : > { %497 = vmatpush3.bf16.msra.mxu0 %v496_v7  ;;  %s654_s18 = scalar_lea.vmem %s653_s15, 256  ;;  %p655_p10 = scmp.lt.s32.totalorder %s955_s16, %s653_s15 }
  0x5e   : > { %498 = vmatprep.subr.bf16.mxu0 %v740_v0  ;;  %p651_p13 = pneg %p650_p7  ;;  %p656_p12 = scmp.lt.s32.totalorder %s654_s18, %s648_s8 }
  0x60   : > { %p657_p1 = por %p656_p12, %p655_p10 }
  0x61   : > { %500 = vmatpush3.bf16.msra.mxu0 %v499_v10 }
  0x62   : > { %501 = vmatprep.subr.bf16.mxu0 %v740_v0  ;;  %p658_p2 = pnand %p657_p1, %p651_p13 }
  0x65   : > { %503 = vmatpush3.bf16.msra.mxu0 %v502_v13 }
  0x66   : > { %504 = vmatprep.subr.bf16.mxu0 %v740_v0 }
  0x69   : > { %506 = vmatpush3.bf16.msra.mxu0 %v505_v16 }
  0x6a   : > { %507 = vmatprep.subr.bf16.mxu0 %v740_v0 }
  0x6d   : > { %509 = vmatpush3.bf16.msra.mxu0 %v508_v19 }
  0x6e   : > { %510 = vmatprep.subr.bf16.mxu0 %v740_v0 }
  0x71   : > { %512 = vmatpush3.bf16.msra.mxu0 %v511_v22 }
  0x72   : > { %513 = vmatprep.subr.bf16.mxu0 %v740_v0 }
  0x75   : > { %515 = vmatpush3.bf16.msra.mxu0 %v514_v25 }
  0x78   : > { %490 = vmatmul.mubr.f32.vlgmr.msra.gmra.mrb[0].mxu0 %v216_v26 }
 0x14b   : > { %v299_v27 = vpop.f32.mrb[0].mxu0 }
 0x14c   : > { %303 = vst [vmem:[%s215_s21] sm:$0xff] %v299_v27  ;;  %v491_v28 = vpop.f32.mrb[1].mxu0 }
 0x14d   : > { %661 = shalt.err (!%p658_p2)
}
 0x14e   : > { %s662_s4 = scalar_lea.hbm %s960_s3, 128  ;;  %s666_s26 = scalar_lea.hbm %s1009_s2, 256 }
 0x14f   : > { %p663_p9 = scmp.ne.s32.totalorder %s960_s3, %s662_s4  ;;  %p667_p6 = scmp.lt.u32.totalorder %s960_s3, %s1009_s2 }
 0x150   : > { %p668_p4 = scmp.lt.u32.totalorder %s666_s26, %s662_s4  ;;  %p670_p0 = scmp.lt.u32.totalorder %s662_s4, %s960_s3 }
 0x151   : > { %p664_p11 = pnand %p663_p9, %p1021_p5 }
 0x152   : > { %p669_p8 = por %p668_p4, %p667_p6 }
 0x153   : > { %p665_p3 = pneg %p664_p11 }
 0x154   : > { %p671_p7 = por %p670_p0, %p669_p8 }
 0x156   : > { %p672_p13 = pnand %p671_p7, %p665_p3 }
 0x158   : > { %675 = shalt.err (!%p672_p13)
}
 0x159   : > { %520 = dma.vmem_to_hbm [thread:$0]  (%p1021_p5), %s955_s16, 128, %s960_s3, %s305_s7  }
 0x15a PF: > { %s331_s5 = sand.u32 1, %s714_s9   ;;  %p1022_p10 = scmp.ne.s32.totalorder %s1015_s24, 0 }
 0x15b   : > { %p1023_p12 = scmp.ge.s32.totalorder %s734_s14, 2  ;;  %s332_s29 = scalar_lea.sflag [#allocation4], %s331_s5 }
 0x15d   : > { %p530_p1 = pnand %p1023_p12, %p1022_p10 }
 0x15f   : > { %709 = dma.done.wait (!%p530_p1), %s332_s29, 128  }
 0x160   : > { %711 = vsyncadd (!%p530_p1), %s332_s29, 4294967168  ;;  %s21_s14 = sadd.s32 1, %s734_s14   ;;  %s1024_s9 = smov %s718_s10 }
 0x161   : > { %p18_p2 = scmp.ge.s32.totalorder %s21_s14, 4   ;;  %s1025_s10 = smov %s722_s11 }
 0x162   : > { %s1026_s11 = smov %s815_s23  ;;  %s1027_s12 = smov %s730_s13 }
 0x163   : > { %s1028_s13 = smov %s1030_s17  ;;  %20 = sbr.rel (!%p18_p2) target bundleno = 8 (0x8), region = 86 }
 0x16a   :  { %337 = vsyncpa [#allocation3], 1 }
 0x16b   :  { %339 = vsyncpa [#allocation3 + $0x1], 1 }
 0x16c   :  { %340 = vsyncpa [#allocation6], 1 }
 0x16d   :  { %342 = vsyncpa [#allocation6 + $0x1], 1 }
 0x16e   :  { %343 = vsyncpa [#allocation4], 1 }
 0x16f   :  { %345 = vsyncpa [#allocation4 + $0x1], 1 }

// kernel: _splat_attention_impl.2
= control target key start
LH: loop header
LB: loop body
LE: loop exit
PB: predicated region body
PF: predicated region fallthrough
CT: control target
= control target key end

     0   :  { %11 = vsyncpa [#allocation4], 0  ;;  %s2110_s0 = inlined_call_operand.hbm [shape: f32[2,8,128], index: 0, kind: input, shape index: {}]   ;;  %s2111_s1 = inlined_call_operand.hbm [shape: f32[128,128], index: 1, kind: input, shape index: {}]   ;;  %s2112_s2 = inlined_call_operand.hbm [shape: f32[2,128], index: 2, kind: input, shape index: {}]   ;;  %s2113_s3 = inlined_call_operand.hbm [shape: f32[128,128], index: 3, kind: input, shape index: {}]   ;;  %s2114_s4 = inlined_call_operand.hbm [shape: f32[2,8,128], index: 4, kind: output, shape index: {0}]   ;;  %s2115_s5 = inlined_call_operand.hbm [shape: f32[2,128,128], index: 5, kind: output, shape index: {1}]  }
   0x1   :  { %13 = vsyncpa [#allocation4 + $0x1], 0 }
   0x2   :  { %14 = vsyncpa [#allocation7], 0 }
   0x3   :  { %15 = vsyncpa [#allocation10], 0 }
   0x4   :  { %16 = vsyncpa [#allocation5], 0 }
   0x5   :  { %18 = vsyncpa [#allocation5 + $0x1], 0 }
   0x6   :  { %19 = vsyncpa [#allocation13], 0 }
   0x7   :  { %21 = vsyncpa [#allocation13 + $0x1], 0  ;;  %s1759_s18 = smov 0   ;;  %s1761_s19 = smov 0  }
   0x8   :  { %s1763_s20 = smov 0   ;;  %s1765_s21 = smov 0  }
   0x9   :  { %s1767_s22 = smov 0   ;;  %s1769_s23 = smov 0  }
   0xa LB: > { %2122 = sst [smem:[#allocation19_spill]] %s1694_s18  ;;  %s1088_s24 = sadd.s32 4294967295, %s1714_s23   ;;  %s1714_s23 = sphi %s1769_s23, %s27_s23   ;;  %s1710_s22 = sphi %s1767_s22, %s2145_s22   ;;  %s1706_s21 = sphi %s1765_s21, %s2144_s21   ;;  %s1702_s20 = sphi %s1763_s20, %s2143_s20   ;;  %s1698_s19 = sphi %s1761_s19, %s2142_s19   ;;  %s1694_s18 = sphi %s1759_s18, %s2141_s18  }
   0xb   : > { %s1089_s25 = sadd.s32 4294967294, %s1714_s23   ;;  %p61_p0 = scmp.ne.s32.totalorder %s1698_s19, %s1694_s18 }
   0xc   : > { %p1793_p1 = scmp.eq.s32.totalorder %s1088_s24, 0  ;;  %p1797_p2 = scmp.eq.s32.totalorder %s1088_s24, 1 }
   0xd   : > { %p156_p3 = scmp.eq.s32.totalorder %s1089_s25, 1  ;;  %p1090_p5 = scmp.ge.s32.totalorder %s1714_s23, 1 }
   0xe   : > { %s2123_s26 = scalar_select %p1793_p1, 1, 0 }
   0xf   : > { %s2124_s27 = scalar_select %p1797_p2, 1, 0 }
  0x10   : > { %p1803_p4 = por %p1793_p1, %p61_p0  ;;  %p1808_p6 = por %p156_p3, %p61_p0 }
  0x11   : > { %p189_p7 = scmp.lt.s32.totalorder %s1714_s23, 3  ;;  %s1716_s6 = smov [#allocation6]  }
  0x12   : > { %s2125_s28 = scalar_select %p1803_p4, 1, 0 }
  0x13   : > { %s2126_s29 = scalar_select %p1808_p6, 1, 0 }
  0x14   : > { %p1813_p8 = pnand %p1090_p5, %p189_p7  ;;  %s201_s7 = sshll.u32 %s1716_s6, 4  ;;  %s1817_s7 = int_to_ptr.vmem [resolvable:$true] %s201_s7 }
  0x15   : > { %2127 = sst [smem:[#allocation20_spill]] %s2126_s29  ;;  %s1717_s9 = smov [#allocation8]  }
  0x16   : > { %s2128_s30 = scalar_select %p1813_p8, 1, 0 }
  0x17   : > { %p1387_p9 = pneg %p1813_p8  ;;  %s215_s10 = sshll.u32 %s1717_s9, 4  ;;  %s1828_s10 = int_to_ptr.vmem [resolvable:$true] %s215_s10 }
  0x18   : > { %s1718_s11 = smov [#allocation9]   ;;  %s1478_s15 = scalar_lea.hbm %s2111_s1, 2048 }
  0x19   : > { %p1824_p11 = pnand %p1387_p9, %p1793_p1  ;;  %s1830_s12 = sshll.u32 %s1718_s11, 4  ;;  %s226_s12 = int_to_ptr.vmem [resolvable:$true] %s1830_s12 }
  0x1a   : > { %p1479_p12 = scmp.ne.s32.totalorder %s2111_s1, %s1478_s15  ;;  %p1485_p5 = scmp.lt.u32.totalorder %s1478_s15, %s2111_s1 }
  0x1b   : > { %p1840_p13 = pneg %p1824_p11 }
  0x1d   : > { %p1481_p0 = pnand %p1840_p13, %p1479_p12 }
  0x1f   : > { %p1482_p3 = pneg %p1481_p0 }
  0x21   : > { %p1487_p7 = pnand %p1485_p5, %p1482_p3 }
  0x23   : > { %1490 = shalt.err (!%p1487_p7)
}
  0x24   : > { %s1491_s9 = scalar_lea.vmem %s1817_s7, 2048  ;;  %p1499_p1 = scmp.lt.s32.totalorder %s1817_s7, %s1817_s7 }
  0x25   : > { %p1492_p9 = scmp.ne.s32.totalorder %s1817_s7, %s1491_s9  ;;  %p1500_p4 = scmp.lt.s32.totalorder %s1491_s9, %s1491_s9 }
  0x27   : > { %p1494_p10 = pnand %p1492_p9, %p1840_p13  ;;  %p1501_p12 = por %p1500_p4, %p1499_p1 }
  0x29   : > { %p1495_p6 = pneg %p1494_p10 }
  0x2b   : > { %p1502_p0 = pnand %p1501_p12, %p1495_p6 }
  0x2d   : > { %1505 = shalt.err (!%p1502_p0)
}
  0x2e   : > { %s1719_s11 = smov 128   ;;  %s1720_s13 = smov 8  }
  0x2f   : > { %1390 = dma.hbm_to_vmem [thread:$0]  (!%p1824_p11), %s2111_s1, 2048, %s1817_s7, [#allocation7], %s1719_s11, %s1719_s11, %s1720_s13  }
  0x30   : > { %s1506_s25 = scalar_lea.hbm %s2112_s2, 32 }
  0x31   : > { %p1507_p1 = scmp.ne.s32.totalorder %s2112_s2, %s1506_s25  ;;  %p1513_p10 = scmp.lt.u32.totalorder %s1506_s25, %s2112_s2 }
  0x33   : > { %p1509_p4 = pnand %p1507_p1, %p1840_p13 }
  0x35   : > { %p1510_p6 = pneg %p1509_p4 }
  0x37   : > { %p1515_p3 = pnand %p1513_p10, %p1510_p6 }
  0x39   : > { %1518 = shalt.err (!%p1515_p3)
}
  0x3a   : > { %s1519_s7 = scalar_lea.vmem %s1828_s10, 32  ;;  %p1527_p12 = scmp.lt.s32.totalorder %s1828_s10, %s1828_s10 }
  0x3b   : > { %p1520_p5 = scmp.ne.s32.totalorder %s1828_s10, %s1519_s7  ;;  %p1528_p0 = scmp.lt.s32.totalorder %s1519_s7, %s1519_s7 }
  0x3d   : > { %p1522_p7 = pnand %p1520_p5, %p1840_p13  ;;  %p1529_p1 = por %p1528_p0, %p1527_p12 }
  0x3f   : > { %p1523_p9 = pneg %p1522_p7 }
  0x41   : > { %p1530_p4 = pnand %p1529_p1, %p1523_p9 }
  0x43   : > { %1533 = shalt.err (!%p1530_p4)
}
  0x44   : > { %1393 = dma.hbm_to_vmem [thread:$0]  (!%p1824_p11), %s2112_s2, 32, %s1828_s10, [#allocation7]  }
  0x45   : > { %s1534_s16 = scalar_lea.hbm %s2113_s3, 2048 }
  0x46   : > { %p1535_p6 = scmp.ne.s32.totalorder %s2113_s3, %s1534_s16  ;;  %p1541_p5 = scmp.lt.u32.totalorder %s1534_s16, %s2113_s3 }
  0x48   : > { %p1537_p10 = pnand %p1535_p6, %p1840_p13 }
  0x4a   : > { %p1538_p3 = pneg %p1537_p10 }
  0x4c   : > { %p1543_p7 = pnand %p1541_p5, %p1538_p3 }
  0x4e   : > { %1546 = shalt.err (!%p1543_p7)
}
  0x4f   : > { %s1547_s7 = scalar_lea.vmem %s226_s12, 2048  ;;  %p1555_p1 = scmp.lt.s32.totalorder %s226_s12, %s226_s12 }
  0x50   : > { %p1548_p9 = scmp.ne.s32.totalorder %s226_s12, %s1547_s7  ;;  %p1556_p4 = scmp.lt.s32.totalorder %s1547_s7, %s1547_s7 }
  0x52   : > { %p1550_p12 = pnand %p1548_p9, %p1840_p13  ;;  %p1557_p8 = por %p1556_p4, %p1555_p1 }
  0x54   : > { %p1551_p0 = pneg %p1550_p12 }
  0x56   : > { %p1558_p2 = pnand %p1557_p8, %p1551_p0 }
  0x58   : > { %1561 = shalt.err (!%p1558_p2)
}
  0x59   : > { %1396 = dma.hbm_to_vmem [thread:$0]  (!%p1824_p11), %s2113_s3, 2048, %s226_s12, [#allocation10], %s1719_s11, %s1719_s11, %s1720_s13  }
  0x5a   : > { %s48_s24 = sadd.s32 1, %s1702_s20  ;;  %s39_s8 = sadd.s32 1, %s1710_s22 }
  0x5b   : > { %p55_p2 = scmp.ne.s32.totalorder %s1702_s20, %s1698_s19  ;;  %p41_p8 = scmp.ge.s32.totalorder %s39_s8, 2 }
  0x5c   : > { %p56_p13 = scmp.eq.s32.totalorder %s1714_s23, 0  ;;  %p2131_p6 = scmp.ne.s32.totalorder %s2124_s27, 0 }
  0x5d   : > { %p1411_p3 = scmp.lt.s32.totalorder %s1714_s23, 2  ;;  %s2147_s8 = smov (%p41_p8, %s39_s8), 0 }
  0x5e   : > { %p1916_p10 = por %p2131_p6, %p55_p2  ;;  %p57_p5 = por %p56_p13, %p55_p2 }
  0x5f   : > { %s239_s14 = sand.u32 1, %s1702_s20   ;;  %s43_s15 = ssub.s32 %s1710_s22, %s2147_s8 }
  0x60   : > { %p46_p7 = scmp.eq.s32.totalorder %s43_s15, 0  ;;  %s1095_s12 = sshll.u32 %s239_s14, 3 }
  0x61   : > { %s1096_s11 = sshll.u32 %s1710_s22, 7  ;;  %s243_s25 = scalar_lea.vmem [#allocation3], %s1095_s12 }
  0x62   : > { %s1928_s13 = scalar_select %p46_p7, %s1702_s20, %s48_s24  }
  0x63   : > { %s1933_s27 = scalar_lea.hbm %s2110_s0, %s1096_s11  ;;  %s251_s6 = sshll.u32 %s243_s25, 4  ;;  %s1935_s6 = int_to_ptr.vmem [resolvable:$true] %s251_s6 }
  0x64   : > { %p1939_p11 = pnand %p1411_p3, %p57_p5  ;;  %s240_s7 = scalar_lea.sflag [#allocation4], %s239_s14 }
  0x65   : > { %s1562_s10 = scalar_lea.hbm %s1933_s27, 128  ;;  %s1567_s15 = scalar_lea.hbm %s2110_s0, 256 }
  0x66   : > { %p1563_p9 = scmp.ne.s32.totalorder %s1933_s27, %s1562_s10  ;;  %p1564_p12 = pneg %p1939_p11 }
  0x67   : > { %p1568_p4 = scmp.lt.u32.totalorder %s1933_s27, %s2110_s0  ;;  %p1569_p2 = scmp.lt.u32.totalorder %s1567_s15, %s1562_s10 }
  0x68   : > { %p1565_p0 = pnand %p1564_p12, %p1563_p9  ;;  %p1571_p13 = scmp.lt.u32.totalorder %s1562_s10, %s1933_s27 }
  0x69   : > { %p1570_p8 = por %p1569_p2, %p1568_p4 }
  0x6a   : > { %p1566_p1 = pneg %p1565_p0 }
  0x6b   : > { %p1572_p6 = por %p1571_p13, %p1570_p8 }
  0x6d   : > { %p1573_p3 = pnand %p1572_p6, %p1566_p1 }
  0x6f   : > { %1576 = shalt.err (!%p1573_p3)
}
  0x70   : > { %s1577_s14 = scalar_lea.vmem %s1935_s6, 128  ;;  %s1721_s16 = smov [#allocation3]  }
  0x71   : > { %p1578_p5 = scmp.ne.s32.totalorder %s1935_s6, %s1577_s14  ;;  %s1582_s17 = sshll.u32 %s1721_s16, 4  ;;  %s1583_s17 = int_to_ptr.vmem [resolvable:$false] %s1582_s17 }
  0x72   : > { %s1584_s25 = scalar_lea.vmem %s1583_s17, 256  ;;  %p1585_p0 = scmp.lt.s32.totalorder %s1935_s6, %s1583_s17 }
  0x73   : > { %p1580_p7 = pnand %p1578_p5, %p1564_p12  ;;  %p1586_p4 = scmp.lt.s32.totalorder %s1584_s25, %s1577_s14 }
  0x75   : > { %p1581_p9 = pneg %p1580_p7  ;;  %p1587_p2 = por %p1586_p4, %p1585_p0 }
  0x77   : > { %p1588_p8 = pnand %p1587_p2, %p1581_p9 }
  0x79   : > { %1591 = shalt.err (!%p1588_p8)
}
  0x7a   : > { %1400 = dma.hbm_to_vmem [thread:$0]  (!%p1939_p11), %s1933_s27, 128, %s1935_s6, %s240_s7  }
  0x7b   : > { %p2134_p1 = scmp.ne.s32.totalorder %s2128_s30, 0 }
  0x7c   : > { %s1971_s10 = sand.u32 (!%p2134_p1), 1, %s1698_s19   ;;  %p2135_p12 = scmp.ne.s32.totalorder (!%p2134_p1), %s2125_s28, 0 }
  0x7d   : > { %260 = sbr.rel (%p2134_p1) target bundleno = 1190 (0x4a6), region = 36  ;;  %s1098_s18 = sshll.u32 (!%p2134_p1), %s1971_s10, 3 }
  0x7e   : > { %s263_s24 = scalar_lea.sflag (!%p2134_p1), [#allocation4], %s1971_s10  ;;  %s266_s15 = scalar_lea.vmem (!%p2134_p1), [#allocation3], %s1098_s18 }
  0x84   : > { %1673 = dma.done.wait (%p2135_p12), %s263_s24, 128  }
  0x85   : > { %1675 = vsyncadd (%p2135_p12), %s263_s24, 4294967168  ;;  %p2136_p11 = scmp.ne.s32.totalorder %s2123_s26, 0 }
  0x87   : > { %1677 = dma.done.wait (%p2136_p11), [#allocation7], 2080  }
  0x88   : > { %1679 = vsyncadd (%p2136_p11), [#allocation7], 4294965216 }
  0x89   : > { %1681 = dma.done.wait (%p2136_p11), [#allocation10], 2048  }
  0x8a   : > { %1683 = vsyncadd (%p2136_p11), [#allocation10], 4294965248  ;;  %v1722_v0 = vmov 0.0|0.0   ;;  %vm1723_vm0 = vmmov 0   ;;  %v1724_v1 = vmov 0.0   ;;  %v316_v2 = vld [vmem:[#allocation6] sm:$0xff] }
  0x8b   : > { %1313 = vmatprep.subr.bf16.mxu0 %v1722_v0  ;;  %1228 = vmatprep.mubr.msk.f32.mxu0 %vm1723_vm0, %v1724_v1  ;;  %v317_v3 = vld [vmem:[#allocation6 + $0x8] sm:$0xff]  ;;  %v318_v4 = vld [vmem:[#allocation6 + $0x10] sm:$0xff]  ;;  %v319_v6 = vld [vmem:[#allocation6 + $0x18] sm:$0xff]  ;;  %s1991_s26 = scalar_lea.vmem [#allocation11], %s1098_s18  ;;  %vm489_vm1 = vcmask 64512   ;;  %s1124_s28 = sshll.u32 %s1706_s21, 7 }
  0x8c   : > { %v1314_v5 = vpack.c.bf16 %v317_v3, %v316_v2  ;;  %v1317_v7 = vpack.c.bf16 %v319_v6, %v318_v4  ;;  %v320_v8 = vld [vmem:[#allocation6 + $0x20] sm:$0xff]  ;;  %v321_v9 = vld [vmem:[#allocation6 + $0x28] sm:$0xff]  ;;  %v310_v10 = vld [vmem:[%s266_s15] sm:$0xff]  ;;  %s931_s30 = sshll.u32 %s1991_s26, 4  ;;  %s2015_s9 = scalar_lea.hbm %s2114_s4, %s1124_s28  ;;  %s932_s30 = int_to_ptr.vmem [resolvable:$true] %s931_s30 }
  0x8d   : > { %v313_v11 = vmul.f32 %v310_v10, %v310_v10  ;;  %1231 = vmatprep.subr.mxu1 %v310_v10  ;;  %v1320_v12 = vpack.c.bf16 %v321_v9, %v320_v8  ;;  %v322_v13 = vld [vmem:[#allocation6 + $0x30] sm:$0xff]  ;;  %v323_v14 = vld [vmem:[#allocation6 + $0x38] sm:$0xff]  ;;  %v324_v16 = vld [vmem:[#allocation6 + $0x40] sm:$0xff]  ;;  %s912_s7 = scalar_lea.sflag [#allocation5], %s1971_s10  ;;  %s1592_s12 = scalar_lea.vmem %s932_s30, 128 }
  0x8e   : > { %1315 = vmatpush3.bf16.msra.mxu0 %v1314_v5  ;;  %1232 = vmatpush3.msra.mxu1 %v310_v10  ;;  %v1323_v15 = vpack.c.bf16 %v323_v14, %v322_v13  ;;  %v325_v17 = vld [vmem:[#allocation6 + $0x48] sm:$0xff]  ;;  %v326_v19 = vld [vmem:[#allocation6 + $0x50] sm:$0xff]  ;;  %v327_v20 = vld [vmem:[#allocation6 + $0x58] sm:$0xff]  ;;  %p1593_p13 = scmp.ne.s32.totalorder %s932_s30, %s1592_s12  ;;  %s1725_s11 = smov [#allocation11]  }
  0x8f   : > { %1316 = vmatprep.subr.bf16.mxu0 %v1722_v0  ;;  %314 = vadd.xlane.f32.xlu0 %v313_v11  ;;  %v1326_v18 = vpack.c.bf16 %v325_v17, %v324_v16  ;;  %v1329_v21 = vpack.c.bf16 %v327_v20, %v326_v19  ;;  %v328_v22 = vld [vmem:[#allocation6 + $0x60] sm:$0xff]  ;;  %v329_v23 = vld [vmem:[#allocation6 + $0x68] sm:$0xff]  ;;  %v330_v25 = vld [vmem:[#allocation6 + $0x70] sm:$0xff]  ;;  %s1596_s14 = sshll.u32 %s1725_s11, 4  ;;  %s1597_s14 = int_to_ptr.vmem [resolvable:$false] %s1596_s14 }
  0x90   : > { %v1332_v24 = vpack.c.bf16 %v329_v23, %v328_v22  ;;  %v331_v26 = vld [vmem:[#allocation6 + $0x78] sm:$0xff]  ;;  %v1104_v28 = vld [vmem:[#allocation8] ss:$0 sm:$0xff]  ;;  %v1105_v31 = vld [vmem:[#allocation8 + $0x1] ss:$0 sm:$0xff]  ;;  %p1594_p6 = pnand %p1593_p13, %p1916_p10  ;;  %s1598_s16 = scalar_lea.vmem %s1597_s14, 256 }
  0x91   : > { %v1335_v27 = vpack.c.bf16 %v331_v26, %v330_v25  ;;  %v734_v42 = vld [vmem:[#allocation9] sm:$0xff]  ;;  %v735_v43 = vld [vmem:[#allocation9 + $0x8] sm:$0xff]  ;;  %v736_v46 = vld [vmem:[#allocation9 + $0x10] sm:$0xff]  ;;  %p1599_p5 = scmp.lt.s32.totalorder %s932_s30, %s1597_s14  ;;  %p1600_p7 = scmp.lt.s32.totalorder %s1598_s16, %s1592_s12 }
  0x92   : > { %1318 = vmatpush3.bf16.msra.mxu0 %v1317_v7  ;;  %v1337_v44 = vpack.c.bf16 %v735_v43, %v734_v42  ;;  %v737_v47 = vld [vmem:[#allocation9 + $0x18] sm:$0xff]  ;;  %v738_v50 = vld [vmem:[#allocation9 + $0x20] sm:$0xff]  ;;  %v739_v51 = vld [vmem:[#allocation9 + $0x28] sm:$0xff]  ;;  %p1595_p3 = pneg %p1594_p6 }
  0x93   : > { %1319 = vmatprep.subr.bf16.mxu0 %v1722_v0  ;;  %v1341_v48 = vpack.c.bf16 %v737_v47, %v736_v46  ;;  %v1345_v52 = vpack.c.bf16 %v739_v51, %v738_v50  ;;  %v740_v54 = vld [vmem:[#allocation9 + $0x30] sm:$0xff]  ;;  %v741_v55 = vld [vmem:[#allocation9 + $0x38] sm:$0xff]  ;;  %v742_v58 = vld [vmem:[#allocation9 + $0x40] sm:$0xff]  ;;  %p1601_p9 = por %p1600_p7, %p1599_p5 }
  0x94   : > { %1338 = vmatprep.subr.bf16.mxu1 %v1337_v44  ;;  %v1349_v56 = vpack.c.bf16 %v741_v55, %v740_v54  ;;  %v743_v59 = vld [vmem:[#allocation9 + $0x48] sm:$0xff]  ;;  %v744_v62 = vld [vmem:[#allocation9 + $0x50] sm:$0xff]  ;;  %v745_v63 = vld [vmem:[#allocation9 + $0x58] sm:$0xff] }
  0x95   : > { %v1353_v60 = vpack.c.bf16 %v743_v59, %v742_v58  ;;  %v746_v2 = vld [vmem:[#allocation9 + $0x60] sm:$0xff]  ;;  %v747_v3 = vld [vmem:[#allocation9 + $0x68] sm:$0xff]  ;;  %v748_v6 = vld [vmem:[#allocation9 + $0x70] sm:$0xff]  ;;  %p1602_p0 = pnand %p1601_p9, %p1595_p3 }
  0x96   : > { %1321 = vmatpush3.bf16.msra.mxu0 %v1320_v12  ;;  %v1361_v4 = vpack.c.bf16 %v747_v3, %v746_v2  ;;  %v749_v7 = vld [vmem:[#allocation9 + $0x78] sm:$0xff] }
  0x97   : > { %1322 = vmatprep.subr.bf16.mxu0 %v1722_v0  ;;  %v1365_v8 = vpack.c.bf16 %v749_v7, %v748_v6 }
  0x9a   : > { %1324 = vmatpush3.bf16.msra.mxu0 %v1323_v15 }
  0x9b   : > { %1325 = vmatprep.subr.bf16.mxu0 %v1722_v0 }
  0x9e   : > { %1327 = vmatpush3.bf16.msra.mxu0 %v1326_v18 }
  0x9f   : > { %1328 = vmatprep.subr.bf16.mxu0 %v1722_v0 }
  0xa2   : > { %1330 = vmatpush3.bf16.msra.mxu0 %v1329_v21 }
  0xa3   : > { %1331 = vmatprep.subr.bf16.mxu0 %v1722_v0 }
  0xa6   : > { %1333 = vmatpush3.bf16.msra.mxu0 %v1332_v24 }
  0xa7   : > { %1334 = vmatprep.subr.bf16.mxu0 %v1722_v0  ;;  %v1357_v0 = vpack.c.bf16 %v745_v63, %v744_v62 }
  0xaa   : > { %1336 = vmatpush3.bf16.msra.mxu0 %v1335_v27 }
  0xad   : > { %1229 = vmatmul.mubr.f32.vlgmr.msra.gmra.mrb[0].mxu0 %v310_v10 }
 0x11c   : > { %v315_v29 = vpop.xlane.xlu0 %314 }
 0x11d   : > { %v406_v30 = vmul.f32 %v1104_v28, %v315_v29 }
 0x180   : > { %v398_v32 = vpop.f32.mrb[0].mxu0 }
 0x181   : > { %v407_v33 = vadd.f32 %v406_v30, %v398_v32  ;;  %v1230_v34 = vpop.f32.mrb[1].mxu0 }
 0x183   : > { %v412_v35 = vadd.f32 %v1105_v31, %v407_v33 }
 0x185   : > { %v413_v36 = vmul.f32 1.442695, %v412_v35 }
 0x187   : > { %1474 = vpow2.f32 %v413_v36 }
 0x191   : > { %v1475_v37 = vpop.eup %1474 }
 0x192   : > { %415 = vadd.xlane.f32.xlu0 %v1475_v37 }
 0x21f   : > { %v416_v38 = vpop.xlane.xlu0 %415 }
 0x220   : > { %v417_v39 = vadd.f32 1e-08, %v416_v38 }
 0x222   : > { %1476 = vrcp.f32 %v417_v39 }
 0x22c   : > { %v1477_v40 = vpop.eup %1476 }
 0x22d   : > { %v419_v41 = vmul.f32 %v1477_v40, %v1475_v37 }
 0x22f   : > { %457 = vxpose.xlu1.b32.start.end [1/1] (short) %v419_v41, 128  ;;  %420 = vst [vmem:[%s1991_s26] sm:$0xff] %v419_v41 }
 0x2af   : > { %v473_v45 = vpop.trf.xlu1 }
 0x2b0   : > { %1233 = vmatprep.mubr.msk.f32.mxu1 %vm489_vm1, %v473_v45 }
 0x2b3   : > { %v474_v49 = vpop.trf.xlu1 }
 0x2b4   : > { %1234 = vmatmul.mubr.msk.f32.vlgmr.msra.gmra.mrb[0].mxu1 %vm489_vm1, %v474_v49 }
 0x2b5   : > { %1340 = vmatpush3.bf16.msra.mxu1 %v1337_v44 }
 0x2b6   : > { %1342 = vmatprep.subr.bf16.mxu1 %v1341_v48 }
 0x2b7   : > { %v475_v53 = vpop.trf.xlu1 }
 0x2b8   : > { %1236 = vmatprep.mubr.msk.f32.mxu1 %vm489_vm1, %v475_v53 }
 0x2b9   : > { %1344 = vmatpush3.bf16.msra.mxu1 %v1341_v48 }
 0x2ba   : > { %1346 = vmatprep.subr.bf16.mxu1 %v1345_v52 }
 0x2bb   : > { %v476_v57 = vpop.trf.xlu1 }
 0x2bc   : > { %1237 = vmatmul.mubr.msk.f32.gmra.mrb[2].mxu1 %vm489_vm1, %v476_v57 }
 0x2bd   : > { %1348 = vmatpush3.bf16.msra.mxu1 %v1345_v52 }
 0x2be   : > { %1350 = vmatprep.subr.bf16.mxu1 %v1349_v56 }
 0x2bf   : > { %v477_v61 = vpop.trf.xlu1 }
 0x2c0   : > { %1239 = vmatprep.mubr.msk.f32.mxu1 %vm489_vm1, %v477_v61 }
 0x2c1   : > { %1352 = vmatpush3.bf16.msra.mxu1 %v1349_v56 }
 0x2c2   : > { %1354 = vmatprep.subr.bf16.mxu1 %v1353_v60 }
 0x2c3   : > { %v478_v1 = vpop.trf.xlu1 }
 0x2c4   : > { %1240 = vmatmul.mubr.msk.f32.gmra.mrb[4].mxu1 %vm489_vm1, %v478_v1 }
 0x2c5   : > { %1356 = vmatpush3.bf16.msra.mxu1 %v1353_v60 }
 0x2c6   : > { %1358 = vmatprep.subr.bf16.mxu1 %v1357_v0 }
 0x2c7   : > { %v479_v5 = vpop.trf.xlu1 }
 0x2c8   : > { %1242 = vmatprep.mubr.msk.f32.mxu1 %vm489_vm1, %v479_v5 }
 0x2c9   : > { %1360 = vmatpush3.bf16.msra.mxu1 %v1357_v0 }
 0x2ca   : > { %1362 = vmatprep.subr.bf16.mxu1 %v1361_v4 }
 0x2cb   : > { %v480_v9 = vpop.trf.xlu1 }
 0x2cc   : > { %1243 = vmatmul.mubr.msk.f32.gmra.mrb[6].mxu1 %vm489_vm1, %v480_v9 }
 0x2cd   : > { %1364 = vmatpush3.bf16.msra.mxu1 %v1361_v4 }
 0x2ce   : > { %1366 = vmatprep.subr.bf16.mxu1 %v1365_v8 }
 0x2cf   : > { %v481_v10 = vpop.trf.xlu1 }
 0x2d0   : > { %1245 = vmatprep.mubr.msk.f32.mxu1 %vm489_vm1, %v481_v10 }
 0x2d1   : > { %1368 = vmatpush3.bf16.msra.mxu1 %v1365_v8 }
 0x2d3   : > { %v482_v11 = vpop.trf.xlu1 }
 0x2d4   : > { %1246 = vmatmul.mubr.msk.f32.gmra.mrb[8].mxu1 %vm489_vm1, %v482_v11 }
 0x2d7   : > { %v483_v12 = vpop.trf.xlu1 }
 0x2d8   : > { %1248 = vmatprep.mubr.msk.f32.mxu1 %vm489_vm1, %v483_v12 }
 0x2db   : > { %v484_v13 = vpop.trf.xlu1 }
 0x2dc   : > { %1249 = vmatmul.mubr.msk.f32.gmra.mrb[10].mxu1 %vm489_vm1, %v484_v13 }
 0x2df   : > { %v485_v14 = vpop.trf.xlu1 }
 0x2e0   : > { %1251 = vmatprep.mubr.msk.f32.mxu1 %vm489_vm1, %v485_v14 }
 0x2e3   : > { %v486_v15 = vpop.trf.xlu1 }
 0x2e4   : > { %1252 = vmatmul.mubr.msk.f32.gmra.mrb[12].mxu1 %vm489_vm1, %v486_v15 }
 0x2e7   : > { %v487_v16 = vpop.trf.xlu1 }
 0x2e8   : > { %1254 = vmatprep.mubr.msk.f32.mxu1 %vm489_vm1, %v487_v16 }
 0x2eb   : > { %v488_v17 = vpop.trf.xlu1 }
 0x2ec   : > { %1255 = vmatmul.mubr.msk.f32.gmra.mrb[14].mxu1 %vm489_vm1, %v488_v17 }
 0x387   : > { %v1235_v18 = vpop.f32.mrb[0].mxu1 }
 0x388   : > { %v604_v19 = vpop.f32.mrb[1].mxu1 }
 0x389   : > { %1289 = vmatprep.mubr.f32.mxu1 %v604_v19 }
 0x38a   : > { %1290 = vmatmul.mubr.f32.vlgmr.msra.gmra.mrb[16].mxu1 %v1235_v18 }
 0x38f   : > { %v1238_v20 = vpop.f32.mrb[2].mxu1 }
 0x390   : > { %v614_v21 = vpop.f32.mrb[3].mxu1 }
 0x391   : > { %1292 = vmatprep.mubr.f32.mxu1 %v614_v21 }
 0x392   : > { %1293 = vmatmul.mubr.f32.gmra.mrb[18].mxu1 %v1238_v20 }
 0x397   : > { %v1241_v22 = vpop.f32.mrb[4].mxu1 }
 0x398   : > { %v624_v23 = vpop.f32.mrb[5].mxu1 }
 0x399   : > { %1295 = vmatprep.mubr.f32.mxu1 %v624_v23 }
 0x39a   : > { %1296 = vmatmul.mubr.f32.gmra.mrb[20].mxu1 %v1241_v22 }
 0x39f   : > { %v1244_v24 = vpop.f32.mrb[6].mxu1 }
 0x3a0   : > { %v634_v25 = vpop.f32.mrb[7].mxu1 }
 0x3a1   : > { %1298 = vmatprep.mubr.f32.mxu1 %v634_v25 }
 0x3a2   : > { %1299 = vmatmul.mubr.f32.gmra.mrb[22].mxu1 %v1244_v24 }
 0x3a7   : > { %v1247_v26 = vpop.f32.mrb[8].mxu1 }
 0x3a8   : > { %v644_v27 = vpop.f32.mrb[9].mxu1 }
 0x3a9   : > { %1301 = vmatprep.mubr.f32.mxu1 %v644_v27 }
 0x3aa   : > { %1302 = vmatmul.mubr.f32.gmra.mrb[24].mxu1 %v1247_v26 }
 0x3af   : > { %v1250_v28 = vpop.f32.mrb[10].mxu1 }
 0x3b0   : > { %v654_v29 = vpop.f32.mrb[11].mxu1 }
 0x3b1   : > { %1304 = vmatprep.mubr.f32.mxu1 %v654_v29 }
 0x3b2   : > { %1305 = vmatmul.mubr.f32.gmra.mrb[26].mxu1 %v1250_v28 }
 0x3b7   : > { %v1253_v30 = vpop.f32.mrb[12].mxu1 }
 0x3b8   : > { %v664_v31 = vpop.f32.mrb[13].mxu1 }
 0x3b9   : > { %1307 = vmatprep.mubr.f32.mxu1 %v664_v31 }
 0x3ba   : > { %1308 = vmatmul.mubr.f32.gmra.mrb[28].mxu1 %v1253_v30 }
 0x3bf   : > { %v1256_v32 = vpop.f32.mrb[14].mxu1 }
 0x3c0   : > { %v674_v33 = vpop.f32.mrb[15].mxu1 }
 0x3c1   : > { %1310 = vmatprep.mubr.f32.mxu1 %v674_v33 }
 0x3c2   : > { %1311 = vmatmul.mubr.f32.gmra.mrb[30].mxu1 %v1256_v32 }
 0x3c3   : > { %1605 = shalt.err (!%p1602_p0)
}
 0x3c4   : > { %s1606_s17 = scalar_lea.hbm %s2015_s9, 128  ;;  %s1610_s24 = scalar_lea.hbm %s2114_s4, 256 }
 0x3c5   : > { %p1607_p4 = scmp.ne.s32.totalorder %s2015_s9, %s1606_s17  ;;  %p1611_p1 = scmp.lt.u32.totalorder %s2015_s9, %s2114_s4 }
 0x3c6   : > { %p1612_p12 = scmp.lt.u32.totalorder %s1610_s24, %s1606_s17  ;;  %p1614_p13 = scmp.lt.u32.totalorder %s1606_s17, %s2015_s9 }
 0x3c7   : > { %p1608_p2 = pnand %p1607_p4, %p1916_p10 }
 0x3c8   : > { %p1613_p11 = por %p1612_p12, %p1611_p1 }
 0x3c9   : > { %p1609_p8 = pneg %p1608_p2 }
 0x3ca   : > { %p1615_p6 = por %p1614_p13, %p1613_p11 }
 0x3cc   : > { %p1616_p3 = pnand %p1615_p6, %p1609_p8 }
 0x3ce   : > { %1619 = shalt.err (!%p1616_p3)
}
 0x3cf   : > { %1383 = dma.vmem_to_hbm [thread:$0]  (%p1916_p10), %s932_s30, 128, %s2015_s9, %s912_s7  }
 0x3d0   : > { %s1103_s28 = sshll.u32 %s1971_s10, 7  ;;  %s1129_s30 = sshll.u32 %s1706_s21, 11 }
 0x3d1   : > { %s2036_s27 = scalar_lea.vmem [#allocation12], %s1103_s28  ;;  %s2057_s12 = scalar_lea.hbm %s2115_s5, %s1129_s30 }
 0x3d2   : > { %s944_s6 = sshll.u32 %s2036_s27, 4  ;;  %s917_s11 = scalar_lea.sflag [#allocation13], %s1971_s10  ;;  %s2059_s6 = int_to_ptr.vmem [resolvable:$true] %s944_s6 }
 0x3d3   : > { %s1620_s14 = scalar_lea.vmem %s2059_s6, 2048  ;;  %s1726_s21 = smov [#allocation12]  }
 0x3d4   : > { %p1621_p5 = scmp.ne.s32.totalorder %s2059_s6, %s1620_s14  ;;  %s1624_s16 = sshll.u32 %s1726_s21, 4  ;;  %s1625_s16 = int_to_ptr.vmem [resolvable:$false] %s1624_s16 }
 0x3d5   : > { %s1626_s17 = scalar_lea.vmem %s1625_s16, 4096  ;;  %p1627_p0 = scmp.lt.s32.totalorder %s2059_s6, %s1625_s16 }
 0x3d6   : > { %p1622_p7 = pnand %p1621_p5, %p1916_p10  ;;  %p1628_p4 = scmp.lt.s32.totalorder %s1626_s17, %s1620_s14 }
 0x3d8   : > { %p1623_p9 = pneg %p1622_p7  ;;  %p1629_p2 = por %p1628_p4, %p1627_p0 }
 0x3da   : > { %p1630_p8 = pnand %p1629_p2, %p1623_p9 }
 0x45d   : > { %v1291_v34 = vpop.f32.mrb[16].mxu1 }
 0x45e   : > { %896 = vst [vmem:[%s2036_s27 + $0x8] sm:$0xff] %v1291_v34  ;;  %v816_v35 = vpop.f32.mrb[17].mxu1 }
 0x45f   : > { %895 = vst [vmem:[%s2036_s27] sm:$0xff] %v816_v35 }
 0x465   : > { %v1294_v36 = vpop.f32.mrb[18].mxu1 }
 0x466   : > { %898 = vst [vmem:[%s2036_s27 + $0x18] sm:$0xff] %v1294_v36  ;;  %v826_v37 = vpop.f32.mrb[19].mxu1 }
 0x467   : > { %897 = vst [vmem:[%s2036_s27 + $0x10] sm:$0xff] %v826_v37 }
 0x46d   : > { %v1297_v38 = vpop.f32.mrb[20].mxu1 }
 0x46e   : > { %900 = vst [vmem:[%s2036_s27 + $0x28] sm:$0xff] %v1297_v38  ;;  %v836_v39 = vpop.f32.mrb[21].mxu1 }
 0x46f   : > { %899 = vst [vmem:[%s2036_s27 + $0x20] sm:$0xff] %v836_v39 }
 0x475   : > { %v1300_v40 = vpop.f32.mrb[22].mxu1 }
 0x476   : > { %902 = vst [vmem:[%s2036_s27 + $0x38] sm:$0xff] %v1300_v40  ;;  %v846_v41 = vpop.f32.mrb[23].mxu1 }
 0x477   : > { %901 = vst [vmem:[%s2036_s27 + $0x30] sm:$0xff] %v846_v41 }
 0x47d   : > { %v1303_v42 = vpop.f32.mrb[24].mxu1 }
 0x47e   : > { %904 = vst [vmem:[%s2036_s27 + $0x48] sm:$0xff] %v1303_v42  ;;  %v856_v43 = vpop.f32.mrb[25].mxu1 }
 0x47f   : > { %903 = vst [vmem:[%s2036_s27 + $0x40] sm:$0xff] %v856_v43 }
 0x485   : > { %v1306_v44 = vpop.f32.mrb[26].mxu1 }
 0x486   : > { %906 = vst [vmem:[%s2036_s27 + $0x58] sm:$0xff] %v1306_v44  ;;  %v866_v45 = vpop.f32.mrb[27].mxu1 }
 0x487   : > { %905 = vst [vmem:[%s2036_s27 + $0x50] sm:$0xff] %v866_v45 }
 0x48d   : > { %v1309_v46 = vpop.f32.mrb[28].mxu1 }
 0x48e   : > { %908 = vst [vmem:[%s2036_s27 + $0x68] sm:$0xff] %v1309_v46  ;;  %v876_v47 = vpop.f32.mrb[29].mxu1 }
 0x48f   : > { %907 = vst [vmem:[%s2036_s27 + $0x60] sm:$0xff] %v876_v47 }
 0x495   : > { %v1312_v48 = vpop.f32.mrb[30].mxu1 }
 0x496   : > { %910 = vst [vmem:[%s2036_s27 + $0x78] sm:$0xff] %v1312_v48  ;;  %v886_v49 = vpop.f32.mrb[31].mxu1 }
 0x497   : > { %909 = vst [vmem:[%s2036_s27 + $0x70] sm:$0xff] %v886_v49 }
 0x498   : > { %1633 = shalt.err (!%p1630_p8)
}
 0x499   : > { %s1634_s25 = scalar_lea.hbm %s2057_s12, 2048  ;;  %s1638_s15 = scalar_lea.hbm %s2115_s5, 4096 }
 0x49a   : > { %p1635_p1 = scmp.ne.s32.totalorder %s2057_s12, %s1634_s25  ;;  %p1639_p13 = scmp.lt.u32.totalorder %s2057_s12, %s2115_s5 }
 0x49b   : > { %p1640_p6 = scmp.lt.u32.totalorder %s1638_s15, %s1634_s25  ;;  %p1642_p5 = scmp.lt.u32.totalorder %s1634_s25, %s2057_s12 }
 0x49c   : > { %p1636_p12 = pnand %p1635_p1, %p1916_p10 }
 0x49d   : > { %p1641_p3 = por %p1640_p6, %p1639_p13 }
 0x49e   : > { %p1637_p11 = pneg %p1636_p12 }
 0x49f   : > { %p1643_p7 = por %p1642_p5, %p1641_p3 }
 0x4a1   : > { %p1644_p9 = pnand %p1643_p7, %p1637_p11 }
 0x4a3   : > { %1647 = shalt.err (!%p1644_p9)
}
 0x4a4   : > { %s1727_s27 = smov 128   ;;  %s1728_s30 = smov 8  }
 0x4a5   : > { %1384 = dma.vmem_to_hbm [thread:$0]  (%p1916_p10), %s2059_s6, 2048, %s2057_s12, %s917_s11, %s1727_s27, %s1727_s27, %s1728_s30  }
 0x4a6 PF: > { %s2137_s9 = sld [smem:[#allocation19_spill]]  ;;  %s2138_s7 = sld [smem:[#allocation20_spill]] }
 0x4a7   : > { %p2140_p4 = scmp.ge.s32.totalorder %s1714_s23, 2 }
 0x4ac   : > { %s959_s14 = sand.u32 1, %s2137_s9   ;;  %p2139_p0 = scmp.ne.s32.totalorder %s2138_s7, 0 }
 0x4ad   : > { %s960_s21 = scalar_lea.sflag [#allocation5], %s959_s14 }
 0x4ae   : > { %p1402_p2 = pnand %p2140_p4, %p2139_p0 }
 0x4b0   : > { %1685 = dma.done.wait (!%p1402_p2), %s960_s21, 128  }
 0x4b1   : > { %1687 = vsyncadd (!%p1402_p2), %s960_s21, 4294967168  ;;  %s969_s16 = scalar_lea.sflag [#allocation13], %s959_s14 }
 0x4b2   : > { %1689 = dma.done.wait (!%p1402_p2), %s969_s16, 2048  }
 0x4b3   : > { %1691 = vsyncadd (!%p1402_p2), %s969_s16, 4294965248  ;;  %s27_s23 = sadd.s32 1, %s1714_s23   ;;  %s2141_s18 = smov %s1698_s19 }
 0x4b4   : > { %p24_p8 = scmp.ge.s32.totalorder %s27_s23, 4   ;;  %s2142_s19 = smov %s1702_s20 }
 0x4b5   : > { %s2143_s20 = smov %s1928_s13  ;;  %s2144_s21 = smov %s1710_s22 }
 0x4b6   : > { %s2145_s22 = smov %s2147_s8  ;;  %26 = sbr.rel (!%p24_p8) target bundleno = 10 (0xa), region = 118 }
 0x4bd   :  { %974 = vsyncpa [#allocation4], 1 }
 0x4be   :  { %976 = vsyncpa [#allocation4 + $0x1], 1 }
 0x4bf   :  { %977 = vsyncpa [#allocation7], 1 }
 0x4c0   :  { %978 = vsyncpa [#allocation10], 1 }
 0x4c1   :  { %979 = vsyncpa [#allocation5], 1 }
 0x4c2   :  { %981 = vsyncpa [#allocation5 + $0x1], 1 }
 0x4c3   :  { %982 = vsyncpa [#allocation13], 1 }
 0x4c4   :  { %984 = vsyncpa [#allocation13 + $0x1], 1 }

</bundles_post_ra>
